<compile_context>
chip_gen: v7x
topology: tpu7x:2x2x1
jax: 0.10.0
libtpu: 0.0.40
codegen_flags: <defaults>
</compile_context>

<pallas_src>
import functools

import jax
import jax.numpy as jnp
import numpy as np
from jax.experimental import pallas as pl
from jax.experimental.pallas import tpu as pltpu


def _stack_decoder_kernel(x_ref, down_ref, mask_ref, wup_ref, bup_ref,
                          w1_ref, b1_ref, w2_ref, b2_ref, o_ref, *,
                          c_in, h, w, pad_lanes):
    """One batch image per grid step.  All activations live in parity space.

    x_ref    : (1, Cin, H*W)        coarse encoder feature (bf16)
    down_ref : (1, 4, Cin, H*W)     cropped bypass parity planes, zero rows for
                                    the upsample channels (bf16)
    mask_ref : (2, H*W)             [not-col-0, not-col-(W-1)] coarse lane masks
    wup_ref  : (4*Cin, Cin)         stacked transposed-conv taps (zero bypass rows)
    bup_ref  : (Cin, 1)             transposed-conv bias (zero on bypass rows)
    w1_ref   : (Cmid, 9*Cin)        convr1 weight in im2col layout (row padded)
    b1_ref   : (Cmid, 1)
    w2_ref   : (Cfin, 9*Cmid)       convr2 weight in im2col layout (row/col padded)
    b2_ref   : (Cfin, 1)
    o_ref    : (1, Cfin, 4*H*W)     output parity planes, lane-concatenated
    """
    f32 = jnp.float32
    cdt = x_ref.dtype                # MXU operand dtype (bf16)
    hw = h * w

    masks = mask_ref[...]
    m_not_first = masks[0:1, :]      # 0 at coarse col 0     (kills sw == -1 wrap)
    m_not_last = masks[1:2, :]       # 0 at coarse col w-1   (kills sw == +1 wrap)

    # --- ConvTranspose2d(k=2, s=2): ONE fused matmul, all 4 parity planes ----
    x_img = x_ref[0]                                              # (Cin, HW)
    u = jnp.dot(wup_ref[...], x_img, preferred_element_type=f32)  # (4*Cin, HW)
    bup = bup_ref[...]                                            # (Cin, 1)

    # --- crop-concat: bypass rows from down_ref, upsample rows from `u` ------
    cat_planes = [
        (down_ref[0, p].astype(f32) + u[p * c_in:(p + 1) * c_in, :] + bup
         ).astype(cdt)
        for p in range(4)
    ]                                                             # 4 x (Cin, HW)

    def conv3x3_relu(planes, w_mat, bias):
        # 3x3 conv, stride 1, zero padding 1 at FULL resolution, evaluated in
        # parity space: one im2col matmul whose lane axis covers all 4 output
        # parity planes (N = 4*HW = full-resolution pixel count).
        c_src = planes[0].shape[0]
        zpad = jnp.zeros((c_src, pad_lanes), cdt)
        padded = [jnp.concatenate([zpad, pln, zpad], axis=1) for pln in planes]
        taps = []
        for dh in (-1, 0, 1):
            for dw in (-1, 0, 1):
                segs = []
                for a in (0, 1):                    # output parity row
                    for b in (0, 1):                # output parity col
                        a2 = (a + dh) % 2           # source parity row
                        b2 = (b + dw) % 2           # source parity col
                        sh = (a + dh - a2) // 2     # coarse row shift {-1,0,1}
                        sw = (b + dw - b2) // 2     # coarse col shift {-1,0,1}
                        start = pad_lanes + sh * w + sw
                        seg = padded[a2 * 2 + b2][:, start:start + hw]
                        if sw == -1:                # only 6 of 36 segments masked
                            seg = seg * m_not_first
                        elif sw == 1:
                            seg = seg * m_not_last
                        segs.append(seg)
                taps.append(jnp.concatenate(segs, axis=1))        # (C, 4*HW)
        im2col = jnp.concatenate(taps, axis=0)                    # (9*C, 4*HW)
        acc = jnp.dot(w_mat, im2col, preferred_element_type=f32)
        return jnp.maximum(acc + bias, 0.0)                       # (Co, 4*HW) f32

    # --- ConvBnRelu x2 (BatchNorm intentionally not applied, as in reference)
    h1 = conv3x3_relu(cat_planes, w1_ref[...], b1_ref[...])       # (Cmid, 4*HW)
    h1_planes = [h1[:, p * hw:(p + 1) * hw].astype(cdt) for p in range(4)]
    h2 = conv3x3_relu(h1_planes, w2_ref[...], b2_ref[...])        # (Cfin, 4*HW)
    o_ref[0] = h2.astype(o_ref.dtype)


@jax.jit
def stack_decoder_forward(x, down_tensor, w_up, b_up, w1, b1, w2, b2):
    """x: (N,Cin,H,W); down_tensor: (N,Cin-Cout,Hd,Wd); PyTorch weight layouts."""
    n, c_in, h, w = x.shape
    assert w_up.shape[0] == c_in and w_up.shape[2:] == (2, 2)
    c_out = w_up.shape[1]
    hu, wu = 2 * h, 2 * w
    _, c_byp, hd, wd = down_tensor.shape
    crop = (hd - hu) // 2
    assert c_byp + c_out == c_in, "concat channels must equal convr1 in_channels"
    assert w1.shape == (c_out, c_in, 3, 3) and w2.shape == (c_out, c_out, 3, 3)

    hw = h * w
    pad_lanes = ((w + 1 + 127) // 128) * 128     # per-plane H-pad, lane aligned
    c_mid = ((c_out + 7) // 8) * 8               # conv1 out rows (sublane aligned)
    c_fin = ((c_out + 7) // 8) * 8               # conv2 out rows (unmasked stores)
    bf16 = jnp.bfloat16

    # ---- activations: coarse grid + parity-plane decomposition (wrapper-side
    # layout plumbing only; all compute happens in the kernel) ----------------
    x_flat = x.reshape(n, c_in, hw).astype(bf16)
    down_c = down_tensor[:, :, crop:crop + hu, crop:crop + wu]
    dp = down_c.reshape(n, c_byp, h, 2, w, 2)
    dp = jnp.transpose(dp, (0, 3, 5, 1, 2, 4)).reshape(n, 4, c_byp, hw)
    dp = jnp.pad(dp, ((0, 0), (0, 0), (0, c_in - c_byp), (0, 0))).astype(bf16)

    # ---- weights packed once to their matmul layouts (bf16 MXU operands) ----
    wup_t = jnp.transpose(w_up, (2, 3, 1, 0)).reshape(4, c_out, c_in)
    wup_mat = jnp.pad(wup_t, ((0, 0), (c_byp, 0), (0, 0)))
    wup_mat = wup_mat.reshape(4 * c_in, c_in).astype(bf16)
    bup_col = jnp.pad(b_up.reshape(c_out, 1), ((c_byp, 0), (0, 0)))     # f32

    w1_mat = jnp.transpose(w1, (0, 2, 3, 1)).reshape(c_out, 9 * c_in)
    w1_mat = jnp.pad(w1_mat, ((0, c_mid - c_out), (0, 0))).astype(bf16)
    b1_col = jnp.pad(b1.reshape(c_out, 1), ((0, c_mid - c_out), (0, 0)))

    w2_pad = jnp.pad(w2, ((0, 0), (0, c_mid - c_out), (0, 0), (0, 0)))
    w2_mat = jnp.transpose(w2_pad, (0, 2, 3, 1)).reshape(c_out, 9 * c_mid)
    w2_mat = jnp.pad(w2_mat, ((0, c_fin - c_out), (0, 0))).astype(bf16)
    b2_col = jnp.pad(b2.reshape(c_out, 1), ((0, c_fin - c_out), (0, 0)))

    col = jnp.arange(hw, dtype=jnp.int32) % w
    masks = jnp.stack([(col != 0), (col != w - 1)]).astype(bf16)        # (2, HW)

    kernel = functools.partial(_stack_decoder_kernel,
                               c_in=c_in, h=h, w=w, pad_lanes=pad_lanes)

    flops = 2 * n * (4 * c_in * c_in * hw
                     + 9 * c_in * c_mid * 4 * hw
                     + 9 * c_mid * c_fin * 4 * hw)
    bytes_accessed = ((x_flat.size + dp.size + wup_mat.size + w1_mat.size
                       + w2_mat.size + masks.size) * 2
                      + (bup_col.size + b1_col.size + b2_col.size) * 4
                      + n * c_fin * 4 * hw * 4)
    cost = pl.CostEstimate(flops=flops, transcendentals=0,
                           bytes_accessed=bytes_accessed)

    out_flat = pl.pallas_call(
        kernel,
        out_shape=jax.ShapeDtypeStruct((n, c_fin, 4 * hw), jnp.float32),
        grid=(n,),                                    # one image per grid step
        in_specs=[
            pl.BlockSpec((1, c_in, hw), lambda b: (b, 0, 0)),
            pl.BlockSpec((1, 4, c_in, hw), lambda b: (b, 0, 0, 0)),
            pl.BlockSpec((2, hw), lambda b: (0, 0)),
            pl.BlockSpec((4 * c_in, c_in), lambda b: (0, 0)),
            pl.BlockSpec((c_in, 1), lambda b: (0, 0)),
            pl.BlockSpec((c_mid, 9 * c_in), lambda b: (0, 0)),
            pl.BlockSpec((c_mid, 1), lambda b: (0, 0)),
            pl.BlockSpec((c_fin, 9 * c_mid), lambda b: (0, 0)),
            pl.BlockSpec((c_fin, 1), lambda b: (0, 0)),
        ],
        out_specs=pl.BlockSpec((1, c_fin, 4 * hw), lambda b: (b, 0, 0)),
        compiler_params=pltpu.CompilerParams(
            dimension_semantics=("parallel",),        # shard batch across TCs
            vmem_limit_bytes=32 * 1024 * 1024),       # v7x-safe scoped limit
        cost_estimate=cost,
    )(x_flat, dp, masks, wup_mat, bup_col, w1_mat, b1_col, w2_mat, b2_col)

    # parity planes -> full resolution (cheap XLA layout op, outside the kernel)
    out = out_flat[:, :c_out, :].reshape(n, c_out, 2, 2, h, w)
    out = jnp.transpose(out, (0, 1, 4, 2, 5, 3)).reshape(n, c_out, hu, wu)
    return out.astype(x.dtype)


def _reference(x, down_tensor, w_up, b_up, w1, b1, w2, b2):
    n, c_in, h, w = x.shape
    c_out = w_up.shape[1]
    hu, wu = 2 * h, 2 * w
    hi = jax.lax.Precision.HIGHEST
    # ConvTranspose2d(k=2, s=2): out[2i+di, 2j+dj] = sum_ci x[ci,i,j] W[ci,co,di,dj]
    up = jnp.einsum("ncij,code->noidje", x, w_up, precision=hi)
    up = up.reshape(n, c_out, hu, wu) + b_up.reshape(1, -1, 1, 1)
    crop = (down_tensor.shape[2] - hu) // 2
    byp = down_tensor[:, :, crop:crop + hu, crop:crop + wu]
    cat = jnp.concatenate([byp, up], axis=1)

    def conv_relu(t, wt, bt):
        o = jax.lax.conv_general_dilated(
            t, wt, window_strides=(1, 1), padding=((1, 1), (1, 1)),
            dimension_numbers=("NCHW", "OIHW", "NCHW"), precision=hi)
        return jnp.maximum(o + bt.reshape(1, -1, 1, 1), 0.0)

    return conv_relu(conv_relu(cat, w1, b1), w2, b2)


if __name__ == "__main__":
    # StackDecoder(in_channels=8, out_channels=4, padding=1), drop_out=False.
    N, C_IN, C_OUT = 2, 8, 4
    H, W = 16, 16                    # encoder feature -> upsampled to 32x32
    C_BYP = C_IN - C_OUT             # skip-connection channels
    HD = WD = 2 * H + 2              # 34x34 bypass, center-cropped to 32x32

    key = jax.random.PRNGKey(0)
    kx, kd, k1, k2, k3, k4, k5, k6 = jax.random.split(key, 8)

    x = jax.random.normal(kx, (N, C_IN, H, W), dtype=jnp.float32)
    down = jax.random.normal(kd, (N, C_BYP, HD, WD), dtype=jnp.float32)

    def _uniform(k, shape, fan):
        b = 1.0 / np.sqrt(fan)
        return jax.random.uniform(k, shape, minval=-b, maxval=b, dtype=jnp.float32)

    # ConvTranspose2d(C_IN, C_OUT, 2, stride=2): weight (C_IN, C_OUT, 2, 2)
    w_up = _uniform(k1, (C_IN, C_OUT, 2, 2), C_OUT * 4)
    b_up = _uniform(k2, (C_OUT,), C_OUT * 4)
    # convr1: Conv2d(C_IN, C_OUT, 3, padding=1)
    w1 = _uniform(k3, (C_OUT, C_IN, 3, 3), C_IN * 9)
    b1 = _uniform(k4, (C_OUT,), C_IN * 9)
    # convr2: Conv2d(C_OUT, C_OUT, 3, padding=1)
    w2 = _uniform(k5, (C_OUT, C_OUT, 3, 3), C_OUT * 9)
    b2 = _uniform(k6, (C_OUT,), C_OUT * 9)

    out = stack_decoder_forward(x, down, w_up, b_up, w1, b1, w2, b2)
    out = jax.block_until_ready(out)

    ref = _reference(x, down, w_up, b_up, w1, b1, w2, b2)
    assert out.shape == (N, C_OUT, 2 * H, 2 * W), out.shape
    # bf16 MXU operands with f32 accumulation -> slightly looser tolerance.
    np.testing.assert_allclose(np.asarray(out), np.asarray(ref),
                               rtol=3e-2, atol=3e-2)

    print("KERNEL_OK")
</pallas_src>

<mosaic_0001>
module attributes {stable_mosaic.version = 11 : i64} {
  func.func @_stack_decoder_kernel(%arg0: i32, %arg1: memref<1x8x256xbf16, #tpu.memory_space<vmem>>, %arg2: memref<1x4x8x256xbf16, #tpu.memory_space<vmem>>, %arg3: memref<2x256xbf16, #tpu.memory_space<vmem>>, %arg4: memref<32x8xbf16, #tpu.memory_space<vmem>>, %arg5: memref<8x1xf32, #tpu.memory_space<vmem>>, %arg6: memref<8x72xbf16, #tpu.memory_space<vmem>>, %arg7: memref<8x1xf32, #tpu.memory_space<vmem>>, %arg8: memref<8x72xbf16, #tpu.memory_space<vmem>>, %arg9: memref<8x1xf32, #tpu.memory_space<vmem>>, %arg10: memref<1x8x1024xf32, #tpu.memory_space<vmem>>) attributes {dimension_semantics = [#tpu.dimension_semantics<parallel>], iteration_bounds = array<i64: 2>, scalar_prefetch = 0 : i64, scratch_operands = 0 : i64, tpu.core_type = #tpu.core_type<tc>, window_params = [{transform_indices = @transform_0, window_bounds = array<i64: 1, 8, 256>}, {transform_indices = @transform_1, window_bounds = array<i64: 1, 4, 8, 256>}, {pipeline_mode = #tpu.pipeline_mode<synchronous>, transform_indices = @transform_2, window_bounds = array<i64: 2, 256>}, {pipeline_mode = #tpu.pipeline_mode<synchronous>, transform_indices = @transform_3, window_bounds = array<i64: 32, 8>}, {pipeline_mode = #tpu.pipeline_mode<synchronous>, transform_indices = @transform_4, window_bounds = array<i64: 8, 1>}, {pipeline_mode = #tpu.pipeline_mode<synchronous>, transform_indices = @transform_5, window_bounds = array<i64: 8, 72>}, {pipeline_mode = #tpu.pipeline_mode<synchronous>, transform_indices = @transform_6, window_bounds = array<i64: 8, 1>}, {pipeline_mode = #tpu.pipeline_mode<synchronous>, transform_indices = @transform_7, window_bounds = array<i64: 8, 72>}, {pipeline_mode = #tpu.pipeline_mode<synchronous>, transform_indices = @transform_8, window_bounds = array<i64: 8, 1>}, {transform_indices = @transform_9, window_bounds = array<i64: 1, 8, 1024>}]} {
    %c0 = arith.constant 0 : index
    %c0_0 = arith.constant 0 : index
    %0 = vector.load %arg3[%c0, %c0_0] : memref<2x256xbf16, #tpu.memory_space<vmem>>, vector<2x256xbf16>
    %1 = vector.extract_strided_slice %0 {offsets = [0, 0], sizes = [1, 256], strides = [1, 1]} : vector<2x256xbf16> to vector<1x256xbf16>
    %2 = vector.extract_strided_slice %0 {offsets = [1, 0], sizes = [1, 256], strides = [1, 1]} : vector<2x256xbf16> to vector<1x256xbf16>
    %c0_1 = arith.constant 0 : index
    %c0_2 = arith.constant 0 : index
    %c0_3 = arith.constant 0 : index
    %3 = vector.load %arg1[%c0_1, %c0_2, %c0_3] : memref<1x8x256xbf16, #tpu.memory_space<vmem>>, vector<1x8x256xbf16>
    %4 = vector.shape_cast %3 : vector<1x8x256xbf16> to vector<8x256xbf16>
    %c0_4 = arith.constant 0 : index
    %c0_5 = arith.constant 0 : index
    %5 = vector.load %arg4[%c0_4, %c0_5] : memref<32x8xbf16, #tpu.memory_space<vmem>>, vector<32x8xbf16>
    %cst = arith.constant dense<0.000000e+00> : vector<32x256xf32>
    %6 = tpu.matmul %5, %4, %cst {dimension_numbers = #tpu.dot_dimension_numbers<[1], [0], [0], [1], [0, 0, 1, 1], [], []>} : vector<32x8xbf16>, vector<8x256xbf16>, vector<32x256xf32> -> vector<32x256xf32>
    %c0_6 = arith.constant 0 : index
    %c0_7 = arith.constant 0 : index
    %7 = vector.load %arg5[%c0_6, %c0_7] : memref<8x1xf32, #tpu.memory_space<vmem>>, vector<8x1xf32>
    %c0_8 = arith.constant 0 : index
    %c0_9 = arith.constant 0 : index
    %c0_10 = arith.constant 0 : index
    %c0_11 = arith.constant 0 : index
    %8 = vector.load %arg2[%c0_8, %c0_9, %c0_10, %c0_11] : memref<1x4x8x256xbf16, #tpu.memory_space<vmem>>, vector<1x1x8x256xbf16>
    %9 = vector.shape_cast %8 : vector<1x1x8x256xbf16> to vector<8x256xbf16>
    %10 = arith.extf %9 : vector<8x256xbf16> to vector<8x256xf32>
    %11 = vector.extract_strided_slice %6 {offsets = [0, 0], sizes = [8, 256], strides = [1, 1]} : vector<32x256xf32> to vector<8x256xf32>
    %12 = arith.addf %10, %11 : vector<8x256xf32>
    %13 = vector.broadcast %7 : vector<8x1xf32> to vector<8x256xf32>
    %14 = arith.addf %12, %13 : vector<8x256xf32>
    %15 = arith.truncf %14 : vector<8x256xf32> to vector<8x256xbf16>
    %c0_12 = arith.constant 0 : index
    %c1 = arith.constant 1 : index
    %c0_13 = arith.constant 0 : index
    %c0_14 = arith.constant 0 : index
    %16 = vector.load %arg2[%c0_12, %c1, %c0_13, %c0_14] : memref<1x4x8x256xbf16, #tpu.memory_space<vmem>>, vector<1x1x8x256xbf16>
    %17 = vector.shape_cast %16 : vector<1x1x8x256xbf16> to vector<8x256xbf16>
    %18 = arith.extf %17 : vector<8x256xbf16> to vector<8x256xf32>
    %19 = vector.extract_strided_slice %6 {offsets = [8, 0], sizes = [8, 256], strides = [1, 1]} : vector<32x256xf32> to vector<8x256xf32>
    %20 = arith.addf %18, %19 : vector<8x256xf32>
    %21 = vector.broadcast %7 : vector<8x1xf32> to vector<8x256xf32>
    %22 = arith.addf %20, %21 : vector<8x256xf32>
    %23 = arith.truncf %22 : vector<8x256xf32> to vector<8x256xbf16>
    %c0_15 = arith.constant 0 : index
    %c2 = arith.constant 2 : index
    %c0_16 = arith.constant 0 : index
    %c0_17 = arith.constant 0 : index
    %24 = vector.load %arg2[%c0_15, %c2, %c0_16, %c0_17] : memref<1x4x8x256xbf16, #tpu.memory_space<vmem>>, vector<1x1x8x256xbf16>
    %25 = vector.shape_cast %24 : vector<1x1x8x256xbf16> to vector<8x256xbf16>
    %26 = arith.extf %25 : vector<8x256xbf16> to vector<8x256xf32>
    %27 = vector.extract_strided_slice %6 {offsets = [16, 0], sizes = [8, 256], strides = [1, 1]} : vector<32x256xf32> to vector<8x256xf32>
    %28 = arith.addf %26, %27 : vector<8x256xf32>
    %29 = vector.broadcast %7 : vector<8x1xf32> to vector<8x256xf32>
    %30 = arith.addf %28, %29 : vector<8x256xf32>
    %31 = arith.truncf %30 : vector<8x256xf32> to vector<8x256xbf16>
    %c0_18 = arith.constant 0 : index
    %c3 = arith.constant 3 : index
    %c0_19 = arith.constant 0 : index
    %c0_20 = arith.constant 0 : index
    %32 = vector.load %arg2[%c0_18, %c3, %c0_19, %c0_20] : memref<1x4x8x256xbf16, #tpu.memory_space<vmem>>, vector<1x1x8x256xbf16>
    %33 = vector.shape_cast %32 : vector<1x1x8x256xbf16> to vector<8x256xbf16>
    %34 = arith.extf %33 : vector<8x256xbf16> to vector<8x256xf32>
    %35 = vector.extract_strided_slice %6 {offsets = [24, 0], sizes = [8, 256], strides = [1, 1]} : vector<32x256xf32> to vector<8x256xf32>
    %36 = arith.addf %34, %35 : vector<8x256xf32>
    %37 = vector.broadcast %7 : vector<8x1xf32> to vector<8x256xf32>
    %38 = arith.addf %36, %37 : vector<8x256xf32>
    %39 = arith.truncf %38 : vector<8x256xf32> to vector<8x256xbf16>
    %c0_21 = arith.constant 0 : index
    %c0_22 = arith.constant 0 : index
    %40 = vector.load %arg6[%c0_21, %c0_22] : memref<8x72xbf16, #tpu.memory_space<vmem>>, vector<8x72xbf16>
    %c0_23 = arith.constant 0 : index
    %c0_24 = arith.constant 0 : index
    %41 = vector.load %arg7[%c0_23, %c0_24] : memref<8x1xf32, #tpu.memory_space<vmem>>, vector<8x1xf32>
    %cst_25 = arith.constant 0.000000e+00 : bf16
    %42 = vector.broadcast %cst_25 : bf16 to vector<8x128xbf16>
    %43 = tpu.concatenate %42, %15, %42 in 1 : vector<8x128xbf16>, vector<8x256xbf16>, vector<8x128xbf16> -> vector<8x512xbf16>
    %44 = tpu.concatenate %42, %23, %42 in 1 : vector<8x128xbf16>, vector<8x256xbf16>, vector<8x128xbf16> -> vector<8x512xbf16>
    %45 = tpu.concatenate %42, %31, %42 in 1 : vector<8x128xbf16>, vector<8x256xbf16>, vector<8x128xbf16> -> vector<8x512xbf16>
    %46 = tpu.concatenate %42, %39, %42 in 1 : vector<8x128xbf16>, vector<8x256xbf16>, vector<8x128xbf16> -> vector<8x512xbf16>
    %47 = vector.extract_strided_slice %46 {offsets = [0, 111], sizes = [8, 256], strides = [1, 1]} : vector<8x512xbf16> to vector<8x256xbf16>
    %48 = vector.broadcast %1 : vector<1x256xbf16> to vector<8x256xbf16>
    %49 = arith.mulf %47, %48 : vector<8x256xbf16>
    %50 = vector.extract_strided_slice %45 {offsets = [0, 112], sizes = [8, 256], strides = [1, 1]} : vector<8x512xbf16> to vector<8x256xbf16>
    %51 = vector.extract_strided_slice %44 {offsets = [0, 127], sizes = [8, 256], strides = [1, 1]} : vector<8x512xbf16> to vector<8x256xbf16>
    %52 = vector.broadcast %1 : vector<1x256xbf16> to vector<8x256xbf16>
    %53 = arith.mulf %51, %52 : vector<8x256xbf16>
    %54 = vector.extract_strided_slice %43 {offsets = [0, 128], sizes = [8, 256], strides = [1, 1]} : vector<8x512xbf16> to vector<8x256xbf16>
    %55 = tpu.concatenate %49, %50, %53, %54 in 1 : vector<8x256xbf16>, vector<8x256xbf16>, vector<8x256xbf16>, vector<8x256xbf16> -> vector<8x1024xbf16>
    %56 = vector.extract_strided_slice %45 {offsets = [0, 112], sizes = [8, 256], strides = [1, 1]} : vector<8x512xbf16> to vector<8x256xbf16>
    %57 = vector.extract_strided_slice %46 {offsets = [0, 112], sizes = [8, 256], strides = [1, 1]} : vector<8x512xbf16> to vector<8x256xbf16>
    %58 = vector.extract_strided_slice %43 {offsets = [0, 128], sizes = [8, 256], strides = [1, 1]} : vector<8x512xbf16> to vector<8x256xbf16>
    %59 = vector.extract_strided_slice %44 {offsets = [0, 128], sizes = [8, 256], strides = [1, 1]} : vector<8x512xbf16> to vector<8x256xbf16>
    %60 = tpu.concatenate %56, %57, %58, %59 in 1 : vector<8x256xbf16>, vector<8x256xbf16>, vector<8x256xbf16>, vector<8x256xbf16> -> vector<8x1024xbf16>
    %61 = vector.extract_strided_slice %46 {offsets = [0, 112], sizes = [8, 256], strides = [1, 1]} : vector<8x512xbf16> to vector<8x256xbf16>
    %62 = vector.extract_strided_slice %45 {offsets = [0, 113], sizes = [8, 256], strides = [1, 1]} : vector<8x512xbf16> to vector<8x256xbf16>
    %63 = vector.broadcast %2 : vector<1x256xbf16> to vector<8x256xbf16>
    %64 = arith.mulf %62, %63 : vector<8x256xbf16>
    %65 = vector.extract_strided_slice %44 {offsets = [0, 128], sizes = [8, 256], strides = [1, 1]} : vector<8x512xbf16> to vector<8x256xbf16>
    %66 = vector.extract_strided_slice %43 {offsets = [0, 129], sizes = [8, 256], strides = [1, 1]} : vector<8x512xbf16> to vector<8x256xbf16>
    %67 = vector.broadcast %2 : vector<1x256xbf16> to vector<8x256xbf16>
    %68 = arith.mulf %66, %67 : vector<8x256xbf16>
    %69 = tpu.concatenate %61, %64, %65, %68 in 1 : vector<8x256xbf16>, vector<8x256xbf16>, vector<8x256xbf16>, vector<8x256xbf16> -> vector<8x1024xbf16>
    %70 = vector.extract_strided_slice %44 {offsets = [0, 127], sizes = [8, 256], strides = [1, 1]} : vector<8x512xbf16> to vector<8x256xbf16>
    %71 = vector.broadcast %1 : vector<1x256xbf16> to vector<8x256xbf16>
    %72 = arith.mulf %70, %71 : vector<8x256xbf16>
    %73 = vector.extract_strided_slice %43 {offsets = [0, 128], sizes = [8, 256], strides = [1, 1]} : vector<8x512xbf16> to vector<8x256xbf16>
    %74 = vector.extract_strided_slice %46 {offsets = [0, 127], sizes = [8, 256], strides = [1, 1]} : vector<8x512xbf16> to vector<8x256xbf16>
    %75 = vector.broadcast %1 : vector<1x256xbf16> to vector<8x256xbf16>
    %76 = arith.mulf %74, %75 : vector<8x256xbf16>
    %77 = vector.extract_strided_slice %45 {offsets = [0, 128], sizes = [8, 256], strides = [1, 1]} : vector<8x512xbf16> to vector<8x256xbf16>
    %78 = tpu.concatenate %72, %73, %76, %77 in 1 : vector<8x256xbf16>, vector<8x256xbf16>, vector<8x256xbf16>, vector<8x256xbf16> -> vector<8x1024xbf16>
    %79 = vector.extract_strided_slice %43 {offsets = [0, 128], sizes = [8, 256], strides = [1, 1]} : vector<8x512xbf16> to vector<8x256xbf16>
    %80 = vector.extract_strided_slice %44 {offsets = [0, 128], sizes = [8, 256], strides = [1, 1]} : vector<8x512xbf16> to vector<8x256xbf16>
    %81 = vector.extract_strided_slice %45 {offsets = [0, 128], sizes = [8, 256], strides = [1, 1]} : vector<8x512xbf16> to vector<8x256xbf16>
    %82 = vector.extract_strided_slice %46 {offsets = [0, 128], sizes = [8, 256], strides = [1, 1]} : vector<8x512xbf16> to vector<8x256xbf16>
    %83 = tpu.concatenate %79, %80, %81, %82 in 1 : vector<8x256xbf16>, vector<8x256xbf16>, vector<8x256xbf16>, vector<8x256xbf16> -> vector<8x1024xbf16>
    %84 = vector.extract_strided_slice %44 {offsets = [0, 128], sizes = [8, 256], strides = [1, 1]} : vector<8x512xbf16> to vector<8x256xbf16>
    %85 = vector.extract_strided_slice %43 {offsets = [0, 129], sizes = [8, 256], strides = [1, 1]} : vector<8x512xbf16> to vector<8x256xbf16>
    %86 = vector.broadcast %2 : vector<1x256xbf16> to vector<8x256xbf16>
    %87 = arith.mulf %85, %86 : vector<8x256xbf16>
    %88 = vector.extract_strided_slice %46 {offsets = [0, 128], sizes = [8, 256], strides = [1, 1]} : vector<8x512xbf16> to vector<8x256xbf16>
    %89 = vector.extract_strided_slice %45 {offsets = [0, 129], sizes = [8, 256], strides = [1, 1]} : vector<8x512xbf16> to vector<8x256xbf16>
    %90 = vector.broadcast %2 : vector<1x256xbf16> to vector<8x256xbf16>
    %91 = arith.mulf %89, %90 : vector<8x256xbf16>
    %92 = tpu.concatenate %84, %87, %88, %91 in 1 : vector<8x256xbf16>, vector<8x256xbf16>, vector<8x256xbf16>, vector<8x256xbf16> -> vector<8x1024xbf16>
    %93 = vector.extract_strided_slice %46 {offsets = [0, 127], sizes = [8, 256], strides = [1, 1]} : vector<8x512xbf16> to vector<8x256xbf16>
    %94 = vector.broadcast %1 : vector<1x256xbf16> to vector<8x256xbf16>
    %95 = arith.mulf %93, %94 : vector<8x256xbf16>
    %96 = vector.extract_strided_slice %45 {offsets = [0, 128], sizes = [8, 256], strides = [1, 1]} : vector<8x512xbf16> to vector<8x256xbf16>
    %97 = vector.extract_strided_slice %44 {offsets = [0, 143], sizes = [8, 256], strides = [1, 1]} : vector<8x512xbf16> to vector<8x256xbf16>
    %98 = vector.broadcast %1 : vector<1x256xbf16> to vector<8x256xbf16>
    %99 = arith.mulf %97, %98 : vector<8x256xbf16>
    %100 = vector.extract_strided_slice %43 {offsets = [0, 144], sizes = [8, 256], strides = [1, 1]} : vector<8x512xbf16> to vector<8x256xbf16>
    %101 = tpu.concatenate %95, %96, %99, %100 in 1 : vector<8x256xbf16>, vector<8x256xbf16>, vector<8x256xbf16>, vector<8x256xbf16> -> vector<8x1024xbf16>
    %102 = vector.extract_strided_slice %45 {offsets = [0, 128], sizes = [8, 256], strides = [1, 1]} : vector<8x512xbf16> to vector<8x256xbf16>
    %103 = vector.extract_strided_slice %46 {offsets = [0, 128], sizes = [8, 256], strides = [1, 1]} : vector<8x512xbf16> to vector<8x256xbf16>
    %104 = vector.extract_strided_slice %43 {offsets = [0, 144], sizes = [8, 256], strides = [1, 1]} : vector<8x512xbf16> to vector<8x256xbf16>
    %105 = vector.extract_strided_slice %44 {offsets = [0, 144], sizes = [8, 256], strides = [1, 1]} : vector<8x512xbf16> to vector<8x256xbf16>
    %106 = tpu.concatenate %102, %103, %104, %105 in 1 : vector<8x256xbf16>, vector<8x256xbf16>, vector<8x256xbf16>, vector<8x256xbf16> -> vector<8x1024xbf16>
    %107 = vector.extract_strided_slice %46 {offsets = [0, 128], sizes = [8, 256], strides = [1, 1]} : vector<8x512xbf16> to vector<8x256xbf16>
    %108 = vector.extract_strided_slice %45 {offsets = [0, 129], sizes = [8, 256], strides = [1, 1]} : vector<8x512xbf16> to vector<8x256xbf16>
    %109 = vector.broadcast %2 : vector<1x256xbf16> to vector<8x256xbf16>
    %110 = arith.mulf %108, %109 : vector<8x256xbf16>
    %111 = vector.extract_strided_slice %44 {offsets = [0, 144], sizes = [8, 256], strides = [1, 1]} : vector<8x512xbf16> to vector<8x256xbf16>
    %112 = vector.extract_strided_slice %43 {offsets = [0, 145], sizes = [8, 256], strides = [1, 1]} : vector<8x512xbf16> to vector<8x256xbf16>
    %113 = vector.broadcast %2 : vector<1x256xbf16> to vector<8x256xbf16>
    %114 = arith.mulf %112, %113 : vector<8x256xbf16>
    %115 = tpu.concatenate %107, %110, %111, %114 in 1 : vector<8x256xbf16>, vector<8x256xbf16>, vector<8x256xbf16>, vector<8x256xbf16> -> vector<8x1024xbf16>
    %116 = tpu.concatenate %55, %60, %69, %78, %83, %92, %101, %106, %115 in 0 : vector<8x1024xbf16>, vector<8x1024xbf16>, vector<8x1024xbf16>, vector<8x1024xbf16>, vector<8x1024xbf16>, vector<8x1024xbf16>, vector<8x1024xbf16>, vector<8x1024xbf16>, vector<8x1024xbf16> -> vector<72x1024xbf16>
    %cst_26 = arith.constant dense<0.000000e+00> : vector<8x1024xf32>
    %117 = tpu.matmul %40, %116, %cst_26 {dimension_numbers = #tpu.dot_dimension_numbers<[1], [0], [0], [1], [0, 0, 1, 1], [], []>} : vector<8x72xbf16>, vector<72x1024xbf16>, vector<8x1024xf32> -> vector<8x1024xf32>
    %118 = vector.broadcast %41 : vector<8x1xf32> to vector<8x1024xf32>
    %119 = arith.addf %117, %118 : vector<8x1024xf32>
    %cst_27 = arith.constant 0.000000e+00 : f32
    %120 = vector.broadcast %cst_27 : f32 to vector<8x1024xf32>
    %121 = arith.maximumf %119, %120 : vector<8x1024xf32>
    %122 = vector.extract_strided_slice %121 {offsets = [0, 0], sizes = [8, 256], strides = [1, 1]} : vector<8x1024xf32> to vector<8x256xf32>
    %123 = arith.truncf %122 : vector<8x256xf32> to vector<8x256xbf16>
    %124 = vector.extract_strided_slice %121 {offsets = [0, 256], sizes = [8, 256], strides = [1, 1]} : vector<8x1024xf32> to vector<8x256xf32>
    %125 = arith.truncf %124 : vector<8x256xf32> to vector<8x256xbf16>
    %126 = vector.extract_strided_slice %121 {offsets = [0, 512], sizes = [8, 256], strides = [1, 1]} : vector<8x1024xf32> to vector<8x256xf32>
    %127 = arith.truncf %126 : vector<8x256xf32> to vector<8x256xbf16>
    %128 = vector.extract_strided_slice %121 {offsets = [0, 768], sizes = [8, 256], strides = [1, 1]} : vector<8x1024xf32> to vector<8x256xf32>
    %129 = arith.truncf %128 : vector<8x256xf32> to vector<8x256xbf16>
    %c0_28 = arith.constant 0 : index
    %c0_29 = arith.constant 0 : index
    %130 = vector.load %arg8[%c0_28, %c0_29] : memref<8x72xbf16, #tpu.memory_space<vmem>>, vector<8x72xbf16>
    %c0_30 = arith.constant 0 : index
    %c0_31 = arith.constant 0 : index
    %131 = vector.load %arg9[%c0_30, %c0_31] : memref<8x1xf32, #tpu.memory_space<vmem>>, vector<8x1xf32>
    %cst_32 = arith.constant 0.000000e+00 : bf16
    %132 = vector.broadcast %cst_32 : bf16 to vector<8x128xbf16>
    %133 = tpu.concatenate %132, %123, %132 in 1 : vector<8x128xbf16>, vector<8x256xbf16>, vector<8x128xbf16> -> vector<8x512xbf16>
    %134 = tpu.concatenate %132, %125, %132 in 1 : vector<8x128xbf16>, vector<8x256xbf16>, vector<8x128xbf16> -> vector<8x512xbf16>
    %135 = tpu.concatenate %132, %127, %132 in 1 : vector<8x128xbf16>, vector<8x256xbf16>, vector<8x128xbf16> -> vector<8x512xbf16>
    %136 = tpu.concatenate %132, %129, %132 in 1 : vector<8x128xbf16>, vector<8x256xbf16>, vector<8x128xbf16> -> vector<8x512xbf16>
    %137 = vector.extract_strided_slice %136 {offsets = [0, 111], sizes = [8, 256], strides = [1, 1]} : vector<8x512xbf16> to vector<8x256xbf16>
    %138 = vector.broadcast %1 : vector<1x256xbf16> to vector<8x256xbf16>
    %139 = arith.mulf %137, %138 : vector<8x256xbf16>
    %140 = vector.extract_strided_slice %135 {offsets = [0, 112], sizes = [8, 256], strides = [1, 1]} : vector<8x512xbf16> to vector<8x256xbf16>
    %141 = vector.extract_strided_slice %134 {offsets = [0, 127], sizes = [8, 256], strides = [1, 1]} : vector<8x512xbf16> to vector<8x256xbf16>
    %142 = vector.broadcast %1 : vector<1x256xbf16> to vector<8x256xbf16>
    %143 = arith.mulf %141, %142 : vector<8x256xbf16>
    %144 = vector.extract_strided_slice %133 {offsets = [0, 128], sizes = [8, 256], strides = [1, 1]} : vector<8x512xbf16> to vector<8x256xbf16>
    %145 = tpu.concatenate %139, %140, %143, %144 in 1 : vector<8x256xbf16>, vector<8x256xbf16>, vector<8x256xbf16>, vector<8x256xbf16> -> vector<8x1024xbf16>
    %146 = vector.extract_strided_slice %135 {offsets = [0, 112], sizes = [8, 256], strides = [1, 1]} : vector<8x512xbf16> to vector<8x256xbf16>
    %147 = vector.extract_strided_slice %136 {offsets = [0, 112], sizes = [8, 256], strides = [1, 1]} : vector<8x512xbf16> to vector<8x256xbf16>
    %148 = vector.extract_strided_slice %133 {offsets = [0, 128], sizes = [8, 256], strides = [1, 1]} : vector<8x512xbf16> to vector<8x256xbf16>
    %149 = vector.extract_strided_slice %134 {offsets = [0, 128], sizes = [8, 256], strides = [1, 1]} : vector<8x512xbf16> to vector<8x256xbf16>
    %150 = tpu.concatenate %146, %147, %148, %149 in 1 : vector<8x256xbf16>, vector<8x256xbf16>, vector<8x256xbf16>, vector<8x256xbf16> -> vector<8x1024xbf16>
    %151 = vector.extract_strided_slice %136 {offsets = [0, 112], sizes = [8, 256], strides = [1, 1]} : vector<8x512xbf16> to vector<8x256xbf16>
    %152 = vector.extract_strided_slice %135 {offsets = [0, 113], sizes = [8, 256], strides = [1, 1]} : vector<8x512xbf16> to vector<8x256xbf16>
    %153 = vector.broadcast %2 : vector<1x256xbf16> to vector<8x256xbf16>
    %154 = arith.mulf %152, %153 : vector<8x256xbf16>
    %155 = vector.extract_strided_slice %134 {offsets = [0, 128], sizes = [8, 256], strides = [1, 1]} : vector<8x512xbf16> to vector<8x256xbf16>
    %156 = vector.extract_strided_slice %133 {offsets = [0, 129], sizes = [8, 256], strides = [1, 1]} : vector<8x512xbf16> to vector<8x256xbf16>
    %157 = vector.broadcast %2 : vector<1x256xbf16> to vector<8x256xbf16>
    %158 = arith.mulf %156, %157 : vector<8x256xbf16>
    %159 = tpu.concatenate %151, %154, %155, %158 in 1 : vector<8x256xbf16>, vector<8x256xbf16>, vector<8x256xbf16>, vector<8x256xbf16> -> vector<8x1024xbf16>
    %160 = vector.extract_strided_slice %134 {offsets = [0, 127], sizes = [8, 256], strides = [1, 1]} : vector<8x512xbf16> to vector<8x256xbf16>
    %161 = vector.broadcast %1 : vector<1x256xbf16> to vector<8x256xbf16>
    %162 = arith.mulf %160, %161 : vector<8x256xbf16>
    %163 = vector.extract_strided_slice %133 {offsets = [0, 128], sizes = [8, 256], strides = [1, 1]} : vector<8x512xbf16> to vector<8x256xbf16>
    %164 = vector.extract_strided_slice %136 {offsets = [0, 127], sizes = [8, 256], strides = [1, 1]} : vector<8x512xbf16> to vector<8x256xbf16>
    %165 = vector.broadcast %1 : vector<1x256xbf16> to vector<8x256xbf16>
    %166 = arith.mulf %164, %165 : vector<8x256xbf16>
    %167 = vector.extract_strided_slice %135 {offsets = [0, 128], sizes = [8, 256], strides = [1, 1]} : vector<8x512xbf16> to vector<8x256xbf16>
    %168 = tpu.concatenate %162, %163, %166, %167 in 1 : vector<8x256xbf16>, vector<8x256xbf16>, vector<8x256xbf16>, vector<8x256xbf16> -> vector<8x1024xbf16>
    %169 = vector.extract_strided_slice %133 {offsets = [0, 128], sizes = [8, 256], strides = [1, 1]} : vector<8x512xbf16> to vector<8x256xbf16>
    %170 = vector.extract_strided_slice %134 {offsets = [0, 128], sizes = [8, 256], strides = [1, 1]} : vector<8x512xbf16> to vector<8x256xbf16>
    %171 = vector.extract_strided_slice %135 {offsets = [0, 128], sizes = [8, 256], strides = [1, 1]} : vector<8x512xbf16> to vector<8x256xbf16>
    %172 = vector.extract_strided_slice %136 {offsets = [0, 128], sizes = [8, 256], strides = [1, 1]} : vector<8x512xbf16> to vector<8x256xbf16>
    %173 = tpu.concatenate %169, %170, %171, %172 in 1 : vector<8x256xbf16>, vector<8x256xbf16>, vector<8x256xbf16>, vector<8x256xbf16> -> vector<8x1024xbf16>
    %174 = vector.extract_strided_slice %134 {offsets = [0, 128], sizes = [8, 256], strides = [1, 1]} : vector<8x512xbf16> to vector<8x256xbf16>
    %175 = vector.extract_strided_slice %133 {offsets = [0, 129], sizes = [8, 256], strides = [1, 1]} : vector<8x512xbf16> to vector<8x256xbf16>
    %176 = vector.broadcast %2 : vector<1x256xbf16> to vector<8x256xbf16>
    %177 = arith.mulf %175, %176 : vector<8x256xbf16>
    %178 = vector.extract_strided_slice %136 {offsets = [0, 128], sizes = [8, 256], strides = [1, 1]} : vector<8x512xbf16> to vector<8x256xbf16>
    %179 = vector.extract_strided_slice %135 {offsets = [0, 129], sizes = [8, 256], strides = [1, 1]} : vector<8x512xbf16> to vector<8x256xbf16>
    %180 = vector.broadcast %2 : vector<1x256xbf16> to vector<8x256xbf16>
    %181 = arith.mulf %179, %180 : vector<8x256xbf16>
    %182 = tpu.concatenate %174, %177, %178, %181 in 1 : vector<8x256xbf16>, vector<8x256xbf16>, vector<8x256xbf16>, vector<8x256xbf16> -> vector<8x1024xbf16>
    %183 = vector.extract_strided_slice %136 {offsets = [0, 127], sizes = [8, 256], strides = [1, 1]} : vector<8x512xbf16> to vector<8x256xbf16>
    %184 = vector.broadcast %1 : vector<1x256xbf16> to vector<8x256xbf16>
    %185 = arith.mulf %183, %184 : vector<8x256xbf16>
    %186 = vector.extract_strided_slice %135 {offsets = [0, 128], sizes = [8, 256], strides = [1, 1]} : vector<8x512xbf16> to vector<8x256xbf16>
    %187 = vector.extract_strided_slice %134 {offsets = [0, 143], sizes = [8, 256], strides = [1, 1]} : vector<8x512xbf16> to vector<8x256xbf16>
    %188 = vector.broadcast %1 : vector<1x256xbf16> to vector<8x256xbf16>
    %189 = arith.mulf %187, %188 : vector<8x256xbf16>
    %190 = vector.extract_strided_slice %133 {offsets = [0, 144], sizes = [8, 256], strides = [1, 1]} : vector<8x512xbf16> to vector<8x256xbf16>
    %191 = tpu.concatenate %185, %186, %189, %190 in 1 : vector<8x256xbf16>, vector<8x256xbf16>, vector<8x256xbf16>, vector<8x256xbf16> -> vector<8x1024xbf16>
    %192 = vector.extract_strided_slice %135 {offsets = [0, 128], sizes = [8, 256], strides = [1, 1]} : vector<8x512xbf16> to vector<8x256xbf16>
    %193 = vector.extract_strided_slice %136 {offsets = [0, 128], sizes = [8, 256], strides = [1, 1]} : vector<8x512xbf16> to vector<8x256xbf16>
    %194 = vector.extract_strided_slice %133 {offsets = [0, 144], sizes = [8, 256], strides = [1, 1]} : vector<8x512xbf16> to vector<8x256xbf16>
    %195 = vector.extract_strided_slice %134 {offsets = [0, 144], sizes = [8, 256], strides = [1, 1]} : vector<8x512xbf16> to vector<8x256xbf16>
    %196 = tpu.concatenate %192, %193, %194, %195 in 1 : vector<8x256xbf16>, vector<8x256xbf16>, vector<8x256xbf16>, vector<8x256xbf16> -> vector<8x1024xbf16>
    %197 = vector.extract_strided_slice %136 {offsets = [0, 128], sizes = [8, 256], strides = [1, 1]} : vector<8x512xbf16> to vector<8x256xbf16>
    %198 = vector.extract_strided_slice %135 {offsets = [0, 129], sizes = [8, 256], strides = [1, 1]} : vector<8x512xbf16> to vector<8x256xbf16>
    %199 = vector.broadcast %2 : vector<1x256xbf16> to vector<8x256xbf16>
    %200 = arith.mulf %198, %199 : vector<8x256xbf16>
    %201 = vector.extract_strided_slice %134 {offsets = [0, 144], sizes = [8, 256], strides = [1, 1]} : vector<8x512xbf16> to vector<8x256xbf16>
    %202 = vector.extract_strided_slice %133 {offsets = [0, 145], sizes = [8, 256], strides = [1, 1]} : vector<8x512xbf16> to vector<8x256xbf16>
    %203 = vector.broadcast %2 : vector<1x256xbf16> to vector<8x256xbf16>
    %204 = arith.mulf %202, %203 : vector<8x256xbf16>
    %205 = tpu.concatenate %197, %200, %201, %204 in 1 : vector<8x256xbf16>, vector<8x256xbf16>, vector<8x256xbf16>, vector<8x256xbf16> -> vector<8x1024xbf16>
    %206 = tpu.concatenate %145, %150, %159, %168, %173, %182, %191, %196, %205 in 0 : vector<8x1024xbf16>, vector<8x1024xbf16>, vector<8x1024xbf16>, vector<8x1024xbf16>, vector<8x1024xbf16>, vector<8x1024xbf16>, vector<8x1024xbf16>, vector<8x1024xbf16>, vector<8x1024xbf16> -> vector<72x1024xbf16>
    %cst_33 = arith.constant dense<0.000000e+00> : vector<8x1024xf32>
    %207 = tpu.matmul %130, %206, %cst_33 {dimension_numbers = #tpu.dot_dimension_numbers<[1], [0], [0], [1], [0, 0, 1, 1], [], []>} : vector<8x72xbf16>, vector<72x1024xbf16>, vector<8x1024xf32> -> vector<8x1024xf32>
    %208 = vector.broadcast %131 : vector<8x1xf32> to vector<8x1024xf32>
    %209 = arith.addf %207, %208 : vector<8x1024xf32>
    %cst_34 = arith.constant 0.000000e+00 : f32
    %210 = vector.broadcast %cst_34 : f32 to vector<8x1024xf32>
    %211 = arith.maximumf %209, %210 : vector<8x1024xf32>
    %c0_35 = arith.constant 0 : index
    %c0_36 = arith.constant 0 : index
    %c0_37 = arith.constant 0 : index
    %212 = vector.load %arg10[%c0_35, %c0_36, %c0_37] : memref<1x8x1024xf32, #tpu.memory_space<vmem>>, vector<1x8x1024xf32>
    %213 = vector.shape_cast %212 : vector<1x8x1024xf32> to vector<8x1024xf32>
    %214 = vector.shape_cast %211 : vector<8x1024xf32> to vector<1x8x1024xf32>
    tpu.vector_store %arg10[%c0_35, %c0_36, %c0_37], %214 {strides = array<i32>} : memref<1x8x1024xf32, #tpu.memory_space<vmem>>, vector<1x8x1024xf32>,
    return
  }
  func.func @transform_0(%arg0: i32) -> (i32, i32, i32) {
    %c0_i32 = arith.constant 0 : i32
    %c0_i32_0 = arith.constant 0 : i32
    %c0_i32_1 = arith.constant 0 : i32
    return %arg0, %c0_i32, %c0_i32_0 : i32, i32, i32
  }
  func.func @transform_1(%arg0: i32) -> (i32, i32, i32, i32) {
    %c0_i32 = arith.constant 0 : i32
    %c0_i32_0 = arith.constant 0 : i32
    %c0_i32_1 = arith.constant 0 : i32
    %c0_i32_2 = arith.constant 0 : i32
    return %arg0, %c0_i32, %c0_i32_0, %c0_i32_1 : i32, i32, i32, i32
  }
  func.func @transform_2(%arg0: i32) -> (i32, i32) {
    %c0_i32 = arith.constant 0 : i32
    %c0_i32_0 = arith.constant 0 : i32
    %c0_i32_1 = arith.constant 0 : i32
    return %c0_i32, %c0_i32_0 : i32, i32
  }
  func.func @transform_3(%arg0: i32) -> (i32, i32) {
    %c0_i32 = arith.constant 0 : i32
    %c0_i32_0 = arith.constant 0 : i32
    %c0_i32_1 = arith.constant 0 : i32
    return %c0_i32, %c0_i32_0 : i32, i32
  }
  func.func @transform_4(%arg0: i32) -> (i32, i32) {
    %c0_i32 = arith.constant 0 : i32
    %c0_i32_0 = arith.constant 0 : i32
    %c0_i32_1 = arith.constant 0 : i32
    return %c0_i32, %c0_i32_0 : i32, i32
  }
  func.func @transform_5(%arg0: i32) -> (i32, i32) {
    %c0_i32 = arith.constant 0 : i32
    %c0_i32_0 = arith.constant 0 : i32
    %c0_i32_1 = arith.constant 0 : i32
    return %c0_i32, %c0_i32_0 : i32, i32
  }
  func.func @transform_6(%arg0: i32) -> (i32, i32) {
    %c0_i32 = arith.constant 0 : i32
    %c0_i32_0 = arith.constant 0 : i32
    %c0_i32_1 = arith.constant 0 : i32
    return %c0_i32, %c0_i32_0 : i32, i32
  }
  func.func @transform_7(%arg0: i32) -> (i32, i32) {
    %c0_i32 = arith.constant 0 : i32
    %c0_i32_0 = arith.constant 0 : i32
    %c0_i32_1 = arith.constant 0 : i32
    return %c0_i32, %c0_i32_0 : i32, i32
  }
  func.func @transform_8(%arg0: i32) -> (i32, i32) {
    %c0_i32 = arith.constant 0 : i32
    %c0_i32_0 = arith.constant 0 : i32
    %c0_i32_1 = arith.constant 0 : i32
    return %c0_i32, %c0_i32_0 : i32, i32
  }
  func.func @transform_9(%arg0: i32) -> (i32, i32, i32) {
    %c0_i32 = arith.constant 0 : i32
    %c0_i32_0 = arith.constant 0 : i32
    %c0_i32_1 = arith.constant 0 : i32
    return %arg0, %c0_i32, %c0_i32_0 : i32, i32, i32
  }
}

</mosaic_0001>

<bundles_post_ra>
// kernel: stack_decoder_forward.1
= control target key start
LH: loop header
LB: loop body
LE: loop exit
PB: predicated region body
PF: predicated region fallthrough
CT: control target
= control target key end

     0   :  { %s1738_s30 = smov 0   ;;  %s2287_s0 = inlined_call_operand.vmem [shape: bf16[2,8,256], index: 0, kind: input, shape index: {}]   ;;  %s2288_s1 = inlined_call_operand.vmem [shape: bf16[2,4,8,256], index: 1, kind: input, shape index: {}]   ;;  %s2289_s2 = inlined_call_operand.vmem [shape: bf16[2,256], index: 2, kind: input, shape index: {}]   ;;  %s2290_s3 = inlined_call_operand.vmem [shape: bf16[32,8], index: 3, kind: input, shape index: {}]   ;;  %s2291_s4 = inlined_call_operand.vmem [shape: f32[8,1], index: 4, kind: input, shape index: {}]   ;;  %s2292_s5 = inlined_call_operand.vmem [shape: bf16[8,72], index: 5, kind: input, shape index: {}]   ;;  %s2293_s6 = inlined_call_operand.vmem [shape: f32[8,1], index: 6, kind: input, shape index: {}]   ;;  %s2294_s7 = inlined_call_operand.vmem [shape: bf16[8,72], index: 7, kind: input, shape index: {}]   ;;  %s2295_s8 = inlined_call_operand.vmem [shape: f32[8,1], index: 8, kind: input, shape index: {}]   ;;  %s2296_s9 = inlined_call_operand.vmem [shape: f32[2,8,1024], index: 9, kind: output, shape index: {}]  }
   0x1 LB: > { %s1603_s10 = sadd.s32 4294967295, %s1676_s30   ;;  %p1607_p0 = scmp.ge.s32.totalorder %s1676_s30, 1  ;;  %s1676_s30 = sphi %s1738_s30, %s19_s30  }
   0x2   : > { %p297_p1 = scmp.lt.s32.totalorder %s1676_s30, 3 }
   0x4   : > { %p298_p2 = pnand %p1607_p0, %p297_p1 }
   0x5   : > { %p338_p3 = scmp.lt.s32.totalorder (!%p298_p2), %s1603_s10, 1  ;;  %v501_v0 = vlaneseq (!%p298_p2)  ;;  %v1678_v1 = vmov (!%p298_p2), 0   ;;  %v442_v2 = vld [vmem:[%s2291_s4] sm:$0xff] (!%p298_p2)  ;;  %v1679_v4 = vmov (!%p298_p2), 1966171168   ;;  %vm382_vm0 = vcmask (!%p298_p2), 1043456  }
   0x6   : > { %301 = sbr.rel (%p298_p2) target bundleno = 1022 (0x3fe), region = 56  ;;  %421 = vmatprep.mubr.bf16.mxu0 (!%p298_p2), %v1678_v1  ;;  %1664 = vset.pattern.permute.xlu0 (!%p298_p2), %v1678_v1  ;;  %v1624_v3 = vld.sshfl [vmem:[%s2289_s2] sm:$0x11 pattern:$0x75316420] (!%p298_p2)  ;;  %v499_v5 = vunpack.c.l.s4 (!%p298_p2), %v1679_v4  ;;  %vm375_vm1 = vcmask (!%p298_p2), 64512  }
   0x7   : > { %934 = vmatprep.mubr.bf16.mxu1 (!%p298_p2), %v1678_v1  ;;  %1665 = vset.pattern.permute.xlu1 (!%p298_p2), %v1678_v1  ;;  %v502_v6 = vshrl.u32 (!%p298_p2), %v501_v0, 7  ;;  %v497_v8 = vcombine.high (!%p298_p2), %v1624_v3, %v1624_v3  ;;  %v1668_v14 = vld [vmem:[%s2290_s3] sm:$0xff] (!%p298_p2)   ;;  %s1680_s21 = smov (!%p298_p2), 111   ;;  %v1669_v26 = vld [vmem:[%s2290_s3 + $0x8] sm:$0xff] (!%p298_p2)   ;;  %s1681_s24 = smov (!%p298_p2), 127   ;;  %vm544_vm2 = vcmask (!%p298_p2), 1039360  }
   0x8   : > { %450 = vperm.xlu0 (!%p298_p2), %1664, %v442_v2   ;;  %v500_v7 = vunpack.c.0.s8 (!%p298_p2), %v499_v5  ;;  %s1682_s25 = smov (!%p298_p2), 113   ;;  %s1683_s26 = smov (!%p298_p2), 1   ;;  %vm616_vm3 = vcmask (!%p298_p2), 924672   ;;  %vm532_vm4 = vcmask (!%p298_p2), 908288   ;;  %vm585_vm5 = vcmask (!%p298_p2), 7168  }
   0x9   : > { %v517_v16 = vsub.s32 (!%p298_p2), 0, %v502_v6  ;;  %s1684_s27 = smov (!%p298_p2), 15   ;;  %s1685_s28 = smov (!%p298_p2), 17   ;;  %vm644_vm6 = vcmask (!%p298_p2), 121856   ;;  %vm561_vm7 = vcmask (!%p298_p2), 138240   ;;  %vm573_vm8 = vcmask (!%p298_p2), 130048  }
   0xa   : > { %v503_v12 = vsub.s32 (!%p298_p2), %v500_v7, %v502_v6  ;;  %s1686_s29 = smov (!%p298_p2), 16   ;;  %vm876_vm9 = vcmask (!%p298_p2), 588800   ;;  %vm708_vm10 = vcmask (!%p298_p2), 916480  }
   0xc   : > { %v504_v15 = vrot.slane (!%p298_p2), %v1624_v3, %v503_v12  ;;  %v511_v17 = vrot.slane (!%p298_p2), %v497_v8, %v503_v12 }
   0xd   : > { %s2298_s10 = smov (!%p338_p3, %s1603_s10), 1 }
   0xe   : > { %s1643_s15 = sshll.u32 %s2298_s10, 3  ;;  %v513_v18 = vpack.i.b16 %v504_v15, %v504_v15  ;;  %v520_v19 = vpack.i.b16 %v511_v17, %v511_v17  ;;  %v603_v20 = vshrl.u32 %v511_v17, 16  ;;  %v596_v21 = vshrl.u32 %v504_v15, 16  ;;  %s1644_s11 = sshll.u32 %s2298_s10, 5 }
   0xf   : > { %s342_s18 = scalar_lea.vmem %s2287_s0, %s1643_s15  ;;  %s347_s14 = scalar_lea.vmem %s2288_s1, %s1644_s11 }
  0x10   : > { %v355_v9 = vld [vmem:[%s342_s18] sm:$0xff]  ;;  %v518_v22 = vrot.slane %v513_v18, %v517_v16  ;;  %v525_v23 = vrot.slane %v520_v19, %v517_v16  ;;  %v604_v24 = vpack.i.b16 %v603_v20, %v603_v20  ;;  %v597_v25 = vpack.i.b16 %v596_v21, %v596_v21  ;;  %v1621_v36 = vld [vmem:[%s347_s14 + $0x8] sm:$0xff]  ;;  %v1622_v46 = vld [vmem:[%s347_s14 + $0x10] sm:$0xff]  ;;  %s1687_s15 = smov 112  }
  0x11   : > { %v1617_v10 = vcombine.high %v355_v9, %v355_v9  ;;  %v1616_v11 = vcombine.low %v355_v9, %v355_v9  ;;  %v443_v35 = vld [vmem:[%s347_s14] sm:$0xff]  ;;  %v459_v39 = vunpack.c.l.bf16 %v1621_v36  ;;  %v460_v41 = vunpack.c.h.bf16 %v1621_v36  ;;  %v1623_v50 = vld [vmem:[%s347_s14 + $0x18] sm:$0xff] }
  0x12   : > { %528 = vrot.lane.b32.xlu0 %v518_v22, %s1680_s21  ;;  %530 = vrot.lane.b32.xlu1 %v525_v23, %s1680_s21  ;;  %v609_v27 = vrot.slane %v604_v24, %v517_v16  ;;  %v602_v28 = vrot.slane %v597_v25, %v517_v16  ;;  %v444_v37 = vunpack.c.l.bf16 %v443_v35  ;;  %v445_v38 = vunpack.c.h.bf16 %v443_v35 }
  0x13   : > { %1618 = vmatprep.subr.msk.bf16.mxu0 %vm382_vm0, %v1617_v10  ;;  %v384_v13 = vsel %vm382_vm0, %v1616_v11, 0  ;;  %v469_v52 = vunpack.c.l.bf16 %v1622_v46  ;;  %v470_v54 = vunpack.c.h.bf16 %v1622_v46  ;;  %v479_v57 = vunpack.c.l.bf16 %v1623_v50 }
  0x14   : > { %390 = vmatpush1.bf16.msra.mxu0 %v384_v13  ;;  %v480_v61 = vunpack.c.h.bf16 %v1623_v50 }
  0x16   : > { %542 = vrot.lane.b32.xlu0 %v525_v23, %s1681_s24  ;;  %540 = vrot.lane.b32.xlu1 %v518_v22, %s1681_s24 }
  0x17   : > { %1619 = vmatmul.mubr.msk.bf16.vlgmr.msra.gmra.mrb[0].mxu0 %vm375_vm1, %v1668_v14 }
  0x18   : > { %431 = vmatprep.mubr.bf16.mxu0 %v1678_v1 }
  0x1a   : > { %614 = vrot.lane.b32.xlu0 %v609_v27, %s1682_s25  ;;  %612 = vrot.lane.b32.xlu1 %v602_v28, %s1682_s25 }
  0x1e   : > { %626 = vrot.lane.b32.xlu0 %v609_v27, %s1683_s26  ;;  %624 = vrot.lane.b32.xlu1 %v602_v28, %s1683_s26 }
  0x1f   : > { %1620 = vmatmul.mubr.msk.bf16.gmra.mrb[4].mxu0 %vm375_vm1, %v1669_v26 }
  0x20   : > { %975 = vmatprep.mubr.bf16.mxu0 %v1678_v1 }
  0x22   : > { %680 = vrot.lane.b32.xlu0 %v525_v23, %s1684_s27  ;;  %678 = vrot.lane.b32.xlu1 %v518_v22, %s1684_s27 }
  0x26   : > { %721 = vrot.lane.b32.xlu0 %v609_v27, %s1685_s28  ;;  %719 = vrot.lane.b32.xlu1 %v602_v28, %s1685_s28 }
  0x2a   : > { %567 = vrot.lane.b32.xlu1 %v1678_v1, %s1686_s29 }
  0x84   : > { %v1788_v29 = vpop.permute.xlu1 %530 }
  0x87   : > { %v1790_v30 = vpop.permute.xlu0 %450 }
  0x88   : > { %v541_v31 = vpop.permute.xlu1 %540 }
  0x89   : > { %v549_v33 = vmul.bf16 0, %v541_v31 }
  0x8b   : > { %v1792_v32 = vpop.permute.xlu0 %528  ;;  %579 = vrot.lane.b32.xlu1 %v549_v33, %s1683_s26 }
  0x8c   : > { %v537_v34 = vmul.bf16 0, %v1792_v32  ;;  %v613_v13 = vpop.permute.xlu1 %612  ;;  %v1855_v22 = vsel %vm532_vm4, %v1792_v32, %v1788_v29 }
  0x8d   : > { %v621_v33 = vmul.bf16 0, %v613_v13 }
  0x8e   : > { %555 = vrot.lane.b32.xlu0 %v537_v34, %s1685_s28 }
  0x8f   : > { %v1803_v55 = vpop.permute.xlu0 %542 }
  0x90   : > { %v1809_v58 = vsel %vm544_vm2, %v541_v31, %v1803_v55  ;;  %v1857_v24 = vpop.permute.xlu1 %624 }
  0x93   : > { %v1824_v12 = vpop.permute.xlu0 %614 }
  0x94   : > { %v1830_v15 = vsel %vm616_vm3, %v613_v13, %v1824_v12 }
  0x97   : > { %v627_v23 = vpop.permute.xlu0 %626 }
  0x98   : > { %v1868_v31 = vsel %vm585_vm5, %v1857_v24, %v627_v23  ;;  %v634_v35 = vmul.bf16 0, %v627_v23 }
  0xea   : > { %v423_v40 = vpop.f32.mrb[0].mxu0 }
  0xeb   : > { %v446_v42 = vadd.f32 %v444_v37, %v423_v40  ;;  %v425_v43 = vpop.f32.mrb[1].mxu0  ;;  %v681_v40 = vpop.permute.xlu0 %680 }
  0xec   : > { %v447_v44 = vadd.f32 %v445_v38, %v425_v43  ;;  %v427_v45 = vpop.f32.mrb[2].mxu0 }
  0xed   : > { %v461_v47 = vadd.f32 %v459_v39, %v427_v45  ;;  %v429_v48 = vpop.f32.mrb[3].mxu0  ;;  %v453_v25 = vadd.f32 %v1790_v30, %v446_v42 }
  0xee   : > { %v462_v49 = vadd.f32 %v460_v41, %v429_v48  ;;  %v454_v19 = vadd.f32 %v1790_v30, %v447_v44  ;;  %v1898_v41 = vpop.permute.xlu1 %678 }
  0xef   : > { %v463_v51 = vadd.f32 %v461_v47, %v1790_v30  ;;  %v1872_v32 = vpack.c.bf16 %v453_v25, %v453_v25  ;;  %v1902_v42 = vsel %vm644_vm6, %v1898_v41, %v681_v40  ;;  %v722_v44 = vpop.permute.xlu0 %721  ;;  %v688_v47 = vmul.bf16 0, %v681_v40 }
  0xf0   : > { %v464_v53 = vadd.f32 %v462_v49, %v1790_v30  ;;  %v1860_v26 = vpack.c.bf16 %v454_v19, %v454_v19 }
  0xf1   : > { %v1805_v56 = vpack.c.bf16 %v463_v51, %v463_v51  ;;  %v632_v34 = vmul.bf16 %v1857_v24, %v1872_v32  ;;  %v729_v51 = vmul.bf16 0, %v722_v44 }
  0xf2   : > { %v1811_v59 = vpack.c.bf16 %v464_v53, %v464_v53  ;;  %v433_v60 = vpop.f32.mrb[4].mxu0  ;;  %v1910_v45 = vpop.permute.xlu1 %719 }
  0xf3   : > { %v471_v62 = vadd.f32 %v469_v52, %v433_v60  ;;  %v435_v63 = vpop.f32.mrb[5].mxu0  ;;  %v550_v0 = vmul.bf16 %v1809_v58, %v1805_v56  ;;  %v686_v46 = vmul.bf16 %v1898_v41, %v1805_v56  ;;  %v1919_v48 = vsel %vm561_vm7, %v1910_v45, %v722_v44  ;;  %v488_v52 = vld [vmem:[%s2293_s6] sm:$0xff] }
  0xf4   : > { %v472_v2 = vadd.f32 %v470_v54, %v435_v63  ;;  %v437_v3 = vpop.f32.mrb[6].mxu0  ;;  %v551_v4 = vmul.bf16 %v1803_v55, %v1811_v59  ;;  %v687_v43 = vmul.bf16 %v1902_v42, %v1811_v59  ;;  %v728_v49 = vmul.bf16 %v1919_v48, %v1860_v26 }
  0xf5   : > { %v473_v5 = vadd.f32 %v471_v62, %v1790_v30  ;;  %v481_v6 = vadd.f32 %v479_v57, %v437_v3  ;;  %581 = vrot.lane.b32.xlu1 %v550_v0, %s1683_s26  ;;  %v439_v7 = vpop.f32.mrb[7].mxu0  ;;  %v727_v50 = vmul.bf16 %v1910_v45, %v1872_v32  ;;  %v745_v44 = vrot.slane %v1872_v32, 4 }
  0xf6   : > { %v474_v8 = vadd.f32 %v472_v2, %v1790_v30  ;;  %v482_v9 = vadd.f32 %v480_v61, %v439_v7  ;;  %583 = vrot.lane.b32.xlu0 %v551_v4, %s1683_s26  ;;  %v1933_v53 = vpop.permute.xlu1 %567 }
  0xf7   : > { %v1821_v10 = vpack.c.bf16 %v473_v5, %v473_v5  ;;  %v483_v11 = vadd.f32 %v481_v6, %v1790_v30 }
  0xf8   : > { %v1826_v14 = vpack.c.bf16 %v474_v8, %v474_v8  ;;  %v484_v17 = vadd.f32 %v482_v9, %v1790_v30  ;;  %v633_v30 = vmul.bf16 %v1868_v31, %v1860_v26 }
  0xf9   : > { %569 = vrot.lane.b32.xlu1 %v1821_v10, %s1686_s29  ;;  %v1836_v16 = vpack.c.bf16 %v483_v11, %v483_v11  ;;  %v622_v18 = vmul.bf16 %v1830_v15, %v1821_v10  ;;  %v668_v39 = vmul.bf16 %v1857_v24, %v1821_v10 }
  0xfa   : > { %571 = vrot.lane.b32.xlu0 %v1826_v14, %s1686_s29  ;;  %v1845_v20 = vpack.c.bf16 %v484_v17, %v484_v17  ;;  %v623_v21 = vmul.bf16 %v1824_v12, %v1826_v14  ;;  %v669_v38 = vmul.bf16 %v1868_v31, %v1826_v14 }
  0xfb   : > { %v538_v28 = vmul.bf16 %v1855_v22, %v1836_v16  ;;  %v658_v37 = vmul.bf16 %v1809_v58, %v1836_v16 }
  0xfc   : > { %v539_v27 = vmul.bf16 %v1788_v29, %v1845_v20  ;;  %v659_v36 = vmul.bf16 %v1803_v55, %v1845_v20 }
  0xfd   : > { %590 = vrot.lane.b32.xlu1 %v1836_v16, %s1686_s29  ;;  %v1935_v54 = vpop.permute.xlu1 %579 }
  0xfe   : > { %640 = vrot.lane.b32.xlu0 %v622_v18, %s1684_s27 }
 0x100   : > { %v1937_v57 = vpop.permute.xlu0 %555 }
 0x101   : > { %642 = vrot.lane.b32.xlu1 %v623_v21, %s1684_s27 }
 0x102   : > { %592 = vrot.lane.b32.xlu0 %v1845_v20, %s1686_s29 }
 0x105   : > { %559 = vrot.lane.b32.xlu1 %v539_v27, %s1685_s28  ;;  %v746_v27 = vrot.slane %v1860_v26, 4 }
 0x106   : > { %557 = vrot.lane.b32.xlu0 %v538_v28, %s1685_s28 }
 0x109   : > { %652 = vrot.lane.b32.xlu1 %v633_v30, %s1681_s24 }
 0x10a   : > { %638 = vrot.lane.b32.xlu0 %v621_v33, %s1684_s27 }
 0x10d   : > { %650 = vrot.lane.b32.xlu1 %v632_v34, %s1681_s24 }
 0x10e   : > { %654 = vrot.lane.b32.xlu0 %v634_v35, %s1681_s24 }
 0x111   : > { %664 = vrot.lane.b32.xlu1 %v659_v36, %s1683_s26 }
 0x112   : > { %662 = vrot.lane.b32.xlu0 %v658_v37, %s1683_s26 }
 0x115   : > { %674 = vrot.lane.b32.xlu1 %v669_v38, %s1681_s24 }
 0x116   : > { %672 = vrot.lane.b32.xlu0 %v668_v39, %s1681_s24 }
 0x119   : > { %706 = vrot.lane.b32.xlu1 %v1678_v1, %s1687_s15 }
 0x11a   : > { %704 = vrot.lane.b32.xlu0 %v1860_v26, %s1687_s15 }
 0x11d   : > { %702 = vrot.lane.b32.xlu1 %v1872_v32, %s1687_s15 }
 0x11e   : > { %715 = vrot.lane.b32.xlu0 %v1811_v59, %s1687_s15 }
 0x121   : > { %694 = vrot.lane.b32.xlu1 %v687_v43, %s1682_s25 }
 0x122   : > { %713 = vrot.lane.b32.xlu0 %v1805_v56, %s1687_s15 }
 0x125   : > { %692 = vrot.lane.b32.xlu1 %v686_v46, %s1682_s25  ;;  %v748_v46 = vrot.slane %v1811_v59, 4 }
 0x126   : > { %696 = vrot.lane.b32.xlu0 %v688_v47, %s1682_s25 }
 0x129   : > { %735 = vrot.lane.b32.xlu1 %v728_v49, %s1680_s21 }
 0x12a   : > { %733 = vrot.lane.b32.xlu0 %v727_v50, %s1680_s21 }
 0x12d   : > { %873 = vperm.xlu1 %1665, %v488_v52  }
 0x12e   : > { %737 = vrot.lane.b32.xlu0 %v729_v51, %s1680_s21 }
 0x167   : > { %v582_v60 = vpop.permute.xlu1 %581 }
 0x168   : > { %v584_v61 = vpop.permute.xlu0 %583  ;;  %v1953_v28 = vsel %vm585_vm5, %v1935_v54, %v582_v60 }
 0x169   : > { %v1946_v13 = vsel %vm585_vm5, %v582_v60, %v584_v61  ;;  %v749_v47 = vrot.slane %v1953_v28, 4  ;;  %v747_v60 = vrot.slane %v1805_v56, 4 }
 0x16a   : > { %v750_v35 = vrot.slane %v1946_v13, 4 }
 0x16b   : > { %v570_v62 = vpop.permute.xlu1 %569 }
 0x16c   : > { %v572_v63 = vpop.permute.xlu0 %571  ;;  %v574_v6 = vsel %vm573_vm8, %v1933_v53, %v570_v62 }
 0x16d   : > { %v575_v7 = vsel %vm573_vm8, %v570_v62, %v572_v63  ;;  %v741_v19 = vrot.slane %v574_v6, 4  ;;  %v795_v63 = vsel %vm382_vm0, %v1860_v26, %v748_v46  ;;  %v783_v26 = vsel %vm382_vm0, %v1953_v28, %v745_v44 }
 0x16e   : > { %v742_v21 = vrot.slane %v575_v7, 4 }
 0x16f   : > { %v591_v0 = vpop.permute.xlu1 %590 }
 0x170   : > { %v641_v2 = vpop.permute.xlu0 %640  ;;  %v594_v3 = vsel %vm573_vm8, %v1933_v53, %v591_v0 }
 0x171   : > { %v743_v8 = vrot.slane %v594_v3, 4  ;;  %v799_v52 = vsel %vm382_vm0, %v594_v3, %v749_v47  ;;  %v758_v3 = vrot.slane %v1845_v20, 4 }
 0x173   : > { %v643_v4 = vpop.permute.xlu1 %642  ;;  %v775_v34 = vsel %vm382_vm0, %v574_v6, %v743_v8  ;;  %v791_v6 = vsel %vm382_vm0, %v1872_v32, %v747_v60  ;;  %v757_v32 = vrot.slane %v1836_v16, 4 }
 0x174   : > { %v593_v5 = vpop.permute.xlu0 %592  ;;  %v646_v17 = vsel %vm644_vm6, %v641_v2, %v643_v4 }
 0x175   : > { %v595_v9 = vsel %vm573_vm8, %v591_v0, %v593_v5  ;;  %v809_v37 = vsel %vm382_vm0, %v646_v17, %v746_v27 }
 0x176   : > { %v744_v11 = vrot.slane %v595_v9, 4  ;;  %v803_v43 = vsel %vm382_vm0, %v595_v9, %v750_v35  ;;  %v754_v9 = vrot.slane %v1826_v14, 4 }
 0x177   : > { %v560_v18 = vpop.permute.xlu1 %559 }
 0x178   : > { %v558_v23 = vpop.permute.xlu0 %557  ;;  %v779_v25 = vsel %vm382_vm0, %v575_v7, %v744_v11  ;;  %v753_v11 = vrot.slane %v1821_v10, 4 }
 0x179   : > { %v562_v30 = vsel %vm561_vm7, %v1937_v57, %v558_v23  ;;  %v563_v33 = vsel %vm561_vm7, %v558_v23, %v560_v18  ;;  %943 = vmatprep.subr.bf16.mxu0 %v779_v25  ;;  %v839_v23 = vsel %vm382_vm0, %v1826_v14, %v758_v3 }
 0x17a   : > { %944 = vmatpush1.bf16.msra.mxu0 %v775_v34  ;;  %v771_v36 = vsel %vm382_vm0, %v563_v33, %v742_v21  ;;  %v767_v38 = vsel %vm382_vm0, %v562_v30, %v741_v19  ;;  %v835_v34 = vsel %vm382_vm0, %v1821_v10, %v757_v32  ;;  %v787_v10 = vsel %vm382_vm0, %v1946_v13, %v746_v27 }
 0x17b   : > { %902 = vmatprep.subr.bf16.mxu1 %v771_v36  ;;  %945 = vmatprep.subr.bf16.mxu0 %v809_v37  ;;  %v653_v39 = vpop.permute.xlu1 %652  ;;  %v880_v37 = vsel %vm382_vm0, %v1836_v16, 0 }
 0x17c   : > { %v1965_v40 = vpop.permute.xlu0 %638  ;;  %903 = vmatpush1.bf16.msra.mxu1 %v767_v38 }
 0x17d   : > { %v645_v49 = vsel %vm644_vm6, %v1965_v40, %v641_v2  ;;  %904 = vmatprep.subr.bf16.mxu1 %v803_v43  ;;  %v2022_v43 = vld [vmem:[%s2292_s5] sm:$0xf] }
 0x17e   : > { %v806_v50 = vsel %vm382_vm0, %v645_v49, %v745_v44 }
 0x17f   : > { %946 = vmatpush1.bf16.msra.mxu0 %v806_v50  ;;  %v651_v51 = vpop.permute.xlu1 %650 }
 0x180   : > { %v1977_v61 = vsel %vm544_vm2, %v651_v51, %v653_v39  ;;  %v1979_v62 = vpop.permute.xlu0 %654  ;;  %905 = vmatpush1.bf16.msra.mxu1 %v799_v52 }
 0x181   : > { %v755_v0 = vrot.slane %v1977_v61, 4  ;;  %v657_v2 = vsel %vm544_vm2, %v653_v39, %v1979_v62  ;;  %906 = vmatprep.subr.bf16.mxu1 %v795_v63 }
 0x182   : > { %v756_v4 = vrot.slane %v657_v2, 4  ;;  %v825_v51 = vsel %vm382_vm0, %v657_v2, %v754_v9 }
 0x183   : > { %v665_v5 = vpop.permute.xlu1 %664  ;;  %v828_v19 = vsel %vm382_vm0, %v1805_v56, %v755_v0  ;;  %v821_v0 = vsel %vm382_vm0, %v1977_v61, %v753_v11 }
 0x184   : > { %v663_v7 = vpop.permute.xlu0 %662  ;;  %907 = vmatpush1.bf16.msra.mxu1 %v791_v6  ;;  %v831_v8 = vsel %vm382_vm0, %v1811_v59, %v756_v4 }
 0x185   : > { %v666_v17 = vsel %vm585_vm5, %v1935_v54, %v663_v7  ;;  %v667_v18 = vsel %vm585_vm5, %v663_v7, %v665_v5  ;;  %947 = vmatprep.subr.bf16.mxu0 %v831_v8 }
 0x186   : > { %948 = vmatpush1.bf16.msra.mxu0 %v828_v19  ;;  %v853_v21 = vsel %vm382_vm0, %v667_v18, %v754_v9  ;;  %v850_v25 = vsel %vm382_vm0, %v666_v17, %v753_v11  ;;  %v752_v38 = vrot.slane %v667_v18, 4  ;;  %v751_v47 = vrot.slane %v666_v17, 4 }
 0x187   : > { %908 = vmatprep.subr.bf16.mxu1 %v853_v21  ;;  %949 = vmatprep.subr.bf16.mxu0 %v839_v23  ;;  %v675_v30 = vpop.permute.xlu1 %674 }
 0x188   : > { %v673_v33 = vpop.permute.xlu0 %672  ;;  %909 = vmatpush1.bf16.msra.mxu1 %v850_v25  ;;  %v677_v35 = vsel %vm544_vm2, %v675_v30, %v1979_v62  ;;  %v817_v27 = vsel %vm382_vm0, %v1811_v59, %v752_v38  ;;  %v813_v59 = vsel %vm382_vm0, %v1805_v56, %v751_v47 }
 0x189   : > { %1625 = vmatprep.subr.msk.bf16.mxu1 %vm382_vm0, %v1845_v20  ;;  %v676_v36 = vsel %vm544_vm2, %v673_v33, %v675_v30  ;;  %v760_v50 = vrot.slane %v677_v35, 4 }
 0x18a   : > { %950 = vmatpush1.bf16.msra.mxu0 %v835_v34  ;;  %v885_v46 = vsel %vm382_vm0, %v676_v36, 0  ;;  %v759_v60 = vrot.slane %v676_v36, 4 }
 0x18b   : > { %1627 = vmatprep.subr.msk.bf16.mxu0 %vm382_vm0, %v677_v35  ;;  %v2011_v14 = vpop.permute.xlu1 %706  ;;  %v847_v5 = vsel %vm382_vm0, %v1845_v20, %v760_v50 }
 0x18c   : > { %v705_v39 = vpop.permute.xlu0 %704  ;;  %911 = vmatpush1.bf16.msra.mxu1 %v880_v37  ;;  %v843_v11 = vsel %vm382_vm0, %v1836_v16, %v759_v60 }
 0x18d   : > { %984 = vmatprep.subr.bf16.mxu1 %v787_v10 }
 0x18e   : > { %952 = vmatpush1.bf16.msra.mxu0 %v885_v46 }
 0x18f   : > { %1626 = vmatmul.mubr.msk.bf16.vlgmr.msra.gmra.mrb[0].mxu1 %vm876_vm9, %v2022_v43  ;;  %1025 = vmatprep.subr.bf16.mxu0 %v795_v63  ;;  %v703_v49 = vpop.permute.xlu1 %702  ;;  %v710_v63 = vsel %vm708_vm10, %v705_v39, %v2011_v14 }
 0x190   : > { %v716_v13 = vpop.permute.xlu0 %715  ;;  %985 = vmatpush1.bf16.msra.mxu1 %v783_v26  ;;  %1016 = vmatprep.mubr.bf16.mxu1 %v1678_v1  ;;  %v709_v2 = vsel %vm708_vm10, %v703_v49, %v705_v39 }
 0x191   : > { %1628 = vmatmul.mubr.msk.bf16.vlgmr.msra.gmra.mrb[8].mxu0 %vm876_vm9, %v2022_v43  ;;  %986 = vmatprep.subr.bf16.mxu1 %v817_v27  ;;  %v718_v28 = vsel %vm708_vm10, %v716_v13, %v2011_v14  ;;  %v761_v9 = vrot.slane %v709_v2, 4 }
 0x192   : > { %1026 = vmatpush1.bf16.msra.mxu0 %v791_v6  ;;  %1057 = vmatprep.mubr.bf16.mxu0 %v1678_v1  ;;  %v764_v4 = vrot.slane %v718_v28, 4  ;;  %v762_v6 = vrot.slane %v710_v63, 4 }
 0x193   : > { %1027 = vmatprep.subr.bf16.mxu0 %v825_v51  ;;  %v695_v44 = vpop.permute.xlu1 %694 }
 0x194   : > { %v714_v52 = vpop.permute.xlu0 %713  ;;  %987 = vmatpush1.bf16.msra.mxu1 %v813_v59  ;;  %v869_v20 = vsel %vm382_vm0, %v710_v63, %v764_v4 }
 0x195   : > { %988 = vmatprep.subr.bf16.mxu1 %v839_v23  ;;  %v717_v3 = vsel %vm708_vm10, %v714_v52, %v716_v13 }
 0x196   : > { %1028 = vmatpush1.bf16.msra.mxu0 %v821_v0  ;;  %v763_v17 = vrot.slane %v717_v3, 4  ;;  %v891_v25 = vsel %vm382_vm0, %v717_v3, 0 }
 0x197   : > { %1029 = vmatprep.subr.bf16.mxu0 %v847_v5  ;;  %v693_v56 = vpop.permute.xlu1 %692 }
 0x198   : > { %v698_v7 = vsel %vm616_vm3, %v693_v56, %v695_v44  ;;  %v2049_v8 = vpop.permute.xlu0 %696  ;;  %989 = vmatpush1.bf16.msra.mxu1 %v835_v34  ;;  %v865_v23 = vsel %vm382_vm0, %v709_v2, %v763_v17 }
 0x199   : > { %v699_v61 = vsel %vm616_vm3, %v695_v44, %v2049_v8  ;;  %v857_v19 = vsel %vm382_vm0, %v698_v7, %v761_v9 }
 0x19a   : > { %1030 = vmatpush1.bf16.msra.mxu0 %v843_v11  ;;  %v861_v18 = vsel %vm382_vm0, %v699_v61, %v762_v6 }
 0x19b   : > { %990 = vmatprep.subr.bf16.mxu1 %v861_v18  ;;  %1031 = vmatprep.subr.bf16.mxu0 %v869_v20  ;;  %v736_v32 = vpop.permute.xlu1 %735 }
 0x19c   : > { %v734_v21 = vpop.permute.xlu0 %733  ;;  %991 = vmatpush1.bf16.msra.mxu1 %v857_v19 }
 0x19d   : > { %1629 = vmatprep.subr.msk.bf16.mxu1 %vm382_vm0, %v718_v28  ;;  %v739_v16 = vsel %vm532_vm4, %v734_v21, %v736_v32 }
 0x19e   : > { %1032 = vmatpush1.bf16.msra.mxu0 %v865_v23  ;;  %v897_v34 = vsel %vm382_vm0, %v739_v16, 0 }
 0x1a0   : > { %v2062_v30 = vpop.permute.xlu0 %737  ;;  %993 = vmatpush1.bf16.msra.mxu1 %v891_v25 }
 0x1a1   : > { %v740_v33 = vsel %vm532_vm4, %v736_v32, %v2062_v30 }
 0x1a2   : > { %1631 = vmatprep.subr.msk.bf16.mxu0 %vm382_vm0, %v740_v33 }
 0x1a3   : > { %1630 = vmatmul.mubr.msk.bf16.vlgmr.msra.gmra.mrb[4].mxu1 %vm876_vm9, %v2022_v43  ;;  %1034 = vmatpush1.bf16.msra.mxu0 %v897_v34 }
 0x1a4   : > { %1388 = vmatprep.mubr.bf16.mxu1 %v1678_v1 }
 0x1a6   : > { %1632 = vmatmul.mubr.msk.bf16.vlgmr.msra.gmra.mrb[12].mxu0 %vm876_vm9, %v2022_v43 }
 0x1a7   : > { %1429 = vmatprep.mubr.bf16.mxu0 %v1678_v1 }
 0x1ac   : > { %v874_v36 = vpop.permute.xlu1 %873 }
 0x262   : > { %v936_v35 = vpop.f32.mrb[0].mxu1 }
 0x263   : > { %v938_v37 = vpop.f32.mrb[1].mxu1  ;;  %v937_v23 = vadd.f32 %v936_v35, %v874_v36 }
 0x264   : > { %v940_v38 = vpop.f32.mrb[2].mxu1  ;;  %v977_v39 = vpop.f32.mrb[8].mxu0  ;;  %v939_v32 = vadd.f32 %v938_v37, %v874_v36 }
 0x265   : > { %v978_v10 = vadd.f32 %v977_v39, %v874_v36  ;;  %v941_v46 = vpop.f32.mrb[3].mxu1  ;;  %v979_v47 = vpop.f32.mrb[9].mxu0  ;;  %v1066_v34 = vmax.f32 %v937_v23, 0.0 }
 0x266   : > { %v980_v49 = vadd.f32 %v979_v47, %v874_v36  ;;  %v981_v26 = vpop.f32.mrb[10].mxu0  ;;  %v1067_v25 = vmax.f32 %v939_v32, 0.0 }
 0x267   : > { %v1068_v13 = vmax.f32 %v978_v10, 0.0  ;;  %v982_v27 = vpop.f32.mrb[11].mxu0  ;;  %v2112_v38 = vpack.c.bf16 %v1066_v34, %v1066_v34 }
 0x268   : > { %v1069_v50 = vmax.f32 %v980_v49, 0.0  ;;  %v2106_v37 = vpack.c.bf16 %v1067_v25, %v1067_v25 }
 0x269   : > { %v2074_v51 = vpack.c.bf16 %v1068_v13, %v1068_v13 }
 0x26a   : > { %v2076_v28 = vpack.c.bf16 %v1069_v50, %v1069_v50 }
 0x26b   : > { %v1086_v43 = vmul.bf16 %v2074_v51, %v1809_v58 }
 0x26c   : > { %v1087_v44 = vmul.bf16 %v2076_v28, %v1803_v55  ;;  %v1203_v32 = vrot.slane %v2076_v28, 4 }
 0x26d   : > { %1106 = vrot.lane.b32.xlu0 %v1086_v43, %s1683_s26 }
 0x26e   : > { %1108 = vrot.lane.b32.xlu1 %v1087_v44, %s1683_s26 }
 0x276   : > { %v1018_v59 = vpop.f32.mrb[4].mxu1 }
 0x277   : > { %v1019_v52 = vadd.f32 %v1018_v59, %v874_v36  ;;  %v1020_v60 = vpop.f32.mrb[5].mxu1 }
 0x278   : > { %v1021_v63 = vadd.f32 %v1020_v60, %v874_v36  ;;  %v1022_v0 = vpop.f32.mrb[6].mxu1 }
 0x279   : > { %v1070_v2 = vmax.f32 %v1019_v52, 0.0  ;;  %v1023_v4 = vpop.f32.mrb[7].mxu1  ;;  %v1059_v3 = vpop.f32.mrb[12].mxu0 }
 0x27a   : > { %v1071_v5 = vmax.f32 %v1021_v63, 0.0  ;;  %v1060_v56 = vadd.f32 %v1059_v3, %v874_v36  ;;  %v1061_v6 = vpop.f32.mrb[13].mxu0 }
 0x27b   : > { %v2084_v7 = vpack.c.bf16 %v1070_v2, %v1070_v2  ;;  %v1062_v9 = vadd.f32 %v1061_v6, %v874_v36  ;;  %v1063_v17 = vpop.f32.mrb[14].mxu0 }
 0x27c   : > { %v2086_v61 = vpack.c.bf16 %v1071_v5, %v1071_v5  ;;  %v1072_v11 = vmax.f32 %v1060_v56, 0.0  ;;  %v1064_v18 = vpop.f32.mrb[15].mxu0 }
 0x27d   : > { %v1073_v20 = vmax.f32 %v1062_v9, 0.0  ;;  %1098 = vrot.lane.b32.xlu0 %v2084_v7, %s1686_s29  ;;  %v1120_v35 = vmul.bf16 %v2084_v7, %v1830_v15  ;;  %v1150_v39 = vmul.bf16 %v2084_v7, %v1857_v24 }
 0x27e   : > { %v2090_v19 = vpack.c.bf16 %v1072_v11, %v1072_v11  ;;  %1100 = vrot.lane.b32.xlu1 %v2086_v61, %s1686_s29  ;;  %v1121_v36 = vmul.bf16 %v2086_v61, %v1824_v12  ;;  %v1151_v10 = vmul.bf16 %v2086_v61, %v1868_v31 }
 0x27f   : > { %v2094_v21 = vpack.c.bf16 %v1073_v20, %v1073_v20  ;;  %v1201_v20 = vrot.slane %v2106_v37, 4 }
 0x280   : > { %v1084_v16 = vmul.bf16 %v2090_v19, %v1855_v22  ;;  %v1122_v22 = vmul.bf16 %v2112_v38, %v1857_v24  ;;  %v1140_v15 = vmul.bf16 %v2090_v19, %v1809_v58  ;;  %v1160_v58 = vmul.bf16 %v2074_v51, %v1898_v41 }
 0x281   : > { %1114 = vrot.lane.b32.xlu0 %v2090_v19, %s1686_s29  ;;  %v1085_v33 = vmul.bf16 %v2094_v21, %v1788_v29  ;;  %v1123_v29 = vmul.bf16 %v2106_v37, %v1868_v31  ;;  %v1141_v12 = vmul.bf16 %v2094_v21, %v1803_v55  ;;  %v1161_v55 = vmul.bf16 %v2076_v28, %v1902_v42  ;;  %v1083_v42 = vld [vmem:[%s2295_s8] sm:$0xff] }
 0x282   : > { %1116 = vrot.lane.b32.xlu1 %v2094_v21, %s1686_s29  ;;  %v1186_v24 = vmul.bf16 %v2112_v38, %v1910_v45  ;;  %v1187_v31 = vmul.bf16 %v2106_v37, %v1919_v48 }
 0x285   : > { %1090 = vrot.lane.b32.xlu0 %v1084_v16, %s1685_s28  ;;  %v1200_v16 = vrot.slane %v2112_v38, 4 }
 0x286   : > { %1092 = vrot.lane.b32.xlu1 %v1085_v33, %s1685_s28 }
 0x289   : > { %1126 = vrot.lane.b32.xlu0 %v1120_v35, %s1684_s27 }
 0x28a   : > { %1128 = vrot.lane.b32.xlu1 %v1121_v36, %s1684_s27  ;;  %v1202_v36 = vrot.slane %v2074_v51, 4 }
 0x28d   : > { %1136 = vrot.lane.b32.xlu0 %v1123_v29, %s1681_s24 }
 0x28e   : > { %1134 = vrot.lane.b32.xlu1 %v1122_v22, %s1681_s24 }
 0x291   : > { %1144 = vrot.lane.b32.xlu0 %v1140_v15, %s1683_s26  ;;  %v1250_v15 = vsel %vm382_vm0, %v2106_v37, %v1203_v32 }
 0x292   : > { %1146 = vrot.lane.b32.xlu1 %v1141_v12, %s1683_s26 }
 0x295   : > { %1154 = vrot.lane.b32.xlu0 %v1150_v39, %s1681_s24 }
 0x296   : > { %1156 = vrot.lane.b32.xlu1 %v1151_v10, %s1681_s24  ;;  %v1213_v10 = vrot.slane %v2094_v21, 4  ;;  %s1645_s24 = sshll.u32 %s2298_s10, 6 }
 0x297   : > { %s2274_s27 = scalar_lea.vmem %s2296_s9, %s1645_s24 }
 0x299   : > { %1174 = vrot.lane.b32.xlu0 %v2106_v37, %s1687_s15 }
 0x29a   : > { %1182 = vrot.lane.b32.xlu1 %v2076_v28, %s1687_s15 }
 0x29d   : > { %1172 = vrot.lane.b32.xlu0 %v2112_v38, %s1687_s15 }
 0x29e   : > { %1180 = vrot.lane.b32.xlu1 %v2074_v51, %s1687_s15 }
 0x2a1   : > { %1166 = vrot.lane.b32.xlu0 %v1161_v55, %s1682_s25 }
 0x2a2   : > { %1164 = vrot.lane.b32.xlu1 %v1160_v58, %s1682_s25 }
 0x2a5   : > { %1190 = vrot.lane.b32.xlu0 %v1186_v24, %s1680_s21  ;;  %v1246_v24 = vsel %vm382_vm0, %v2112_v38, %v1202_v36  ;;  %v1294_v38 = vsel %vm382_vm0, %v2086_v61, %v1213_v10 }
 0x2a6   : > { %1192 = vrot.lane.b32.xlu1 %v1187_v31, %s1680_s21 }
 0x2a9   : > { %1328 = vperm.xlu0 %1664, %v1083_v42  }
 0x2df   : > { %v1107_v41 = vpop.permute.xlu0 %1106 }
 0x2e0   : > { %v1109_v46 = vpop.permute.xlu1 %1108 }
 0x2e1   : > { %v2164_v59 = vsel %vm585_vm5, %v1107_v41, %v1109_v46  ;;  %v1209_v46 = vrot.slane %v2086_v61, 4 }
 0x2e2   : > { %v1205_v56 = vrot.slane %v2164_v59, 4 }
 0x2ef   : > { %v1099_v47 = vpop.permute.xlu0 %1098 }
 0x2f0   : > { %v1101_v49 = vpop.permute.xlu1 %1100  ;;  %v1102_v43 = vsel %vm573_vm8, %v1933_v53, %v1099_v47 }
 0x2f1   : > { %v1103_v48 = vsel %vm573_vm8, %v1099_v47, %v1101_v49  ;;  %v1196_v4 = vrot.slane %v1102_v43, 4  ;;  %v1212_v47 = vrot.slane %v2090_v19, 4 }
 0x2f2   : > { %v1197_v60 = vrot.slane %v1103_v48, 4 }
 0x2f3   : > { %v1115_v26 = vpop.permute.xlu0 %1114 }
 0x2f4   : > { %v1118_v45 = vsel %vm573_vm8, %v1933_v53, %v1115_v26  ;;  %v1117_v13 = vpop.permute.xlu1 %1116  ;;  %v2173_v53 = vsel %vm585_vm5, %v1935_v54, %v1107_v41 }
 0x2f5   : > { %v1198_v27 = vrot.slane %v1118_v45, 4  ;;  %v1119_v50 = vsel %vm573_vm8, %v1115_v26, %v1117_v13  ;;  %v1204_v23 = vrot.slane %v2173_v53, 4  ;;  %v1208_v26 = vrot.slane %v2084_v7, 4 }
 0x2f6   : > { %v1199_v44 = vrot.slane %v1119_v50, 4  ;;  %v1258_v18 = vsel %vm382_vm0, %v1119_v50, %v1205_v56 }
 0x2f7   : > { %v1091_v52 = vpop.permute.xlu0 %1090  ;;  %v1230_v5 = vsel %vm382_vm0, %v1102_v43, %v1198_v27  ;;  %v1290_v27 = vsel %vm382_vm0, %v2084_v7, %v1212_v47 }
 0x2f8   : > { %v1094_v63 = vsel %vm561_vm7, %v1937_v57, %v1091_v52  ;;  %v1093_v0 = vpop.permute.xlu1 %1092  ;;  %v1234_v2 = vsel %vm382_vm0, %v1103_v48, %v1199_v44  ;;  %v1334_v44 = vsel %vm382_vm0, %v2090_v19, 0 }
 0x2f9   : > { %v1095_v3 = vsel %vm561_vm7, %v1091_v52, %v1093_v0  ;;  %1397 = vmatprep.subr.bf16.mxu0 %v1234_v2  ;;  %v1222_v9 = vsel %vm382_vm0, %v1094_v63, %v1196_v4  ;;  %v1242_v63 = vsel %vm382_vm0, %v2164_v59, %v1201_v20  ;;  %v1238_v4 = vsel %vm382_vm0, %v2173_v53, %v1200_v16 }
 0x2fa   : > { %1398 = vmatpush1.bf16.msra.mxu0 %v1230_v5  ;;  %v1226_v6 = vsel %vm382_vm0, %v1095_v3, %v1197_v60 }
 0x2fb   : > { %1356 = vmatprep.subr.bf16.mxu1 %v1226_v6  ;;  %v1127_v57 = vpop.permute.xlu0 %1126 }
 0x2fc   : > { %v1130_v17 = vsel %vm644_vm6, %v1965_v40, %v1127_v57  ;;  %v1129_v11 = vpop.permute.xlu1 %1128  ;;  %1357 = vmatpush1.bf16.msra.mxu1 %v1222_v9  ;;  %v1254_v40 = vsel %vm382_vm0, %v1118_v45, %v1204_v23 }
 0x2fd   : > { %v1131_v25 = vsel %vm644_vm6, %v1127_v57, %v1129_v11  ;;  %1358 = vmatprep.subr.bf16.mxu1 %v1258_v18  ;;  %v1261_v35 = vsel %vm382_vm0, %v1130_v17, %v1200_v16 }
 0x2fe   : > { %v1264_v33 = vsel %vm382_vm0, %v1131_v25, %v1201_v20 }
 0x2ff   : > { %1399 = vmatprep.subr.bf16.mxu0 %v1264_v33  ;;  %v1137_v34 = vpop.permute.xlu0 %1136 }
 0x300   : > { %v1139_v29 = vsel %vm544_vm2, %v1137_v34, %v1979_v62  ;;  %1359 = vmatpush1.bf16.msra.mxu1 %v1254_v40  ;;  %1400 = vmatpush1.bf16.msra.mxu0 %v1261_v35  ;;  %v1135_v22 = vpop.permute.xlu1 %1134 }
 0x301   : > { %v1211_v12 = vrot.slane %v1139_v29, 4  ;;  %v2195_v39 = vsel %vm544_vm2, %v1135_v22, %v1137_v34  ;;  %1360 = vmatprep.subr.bf16.mxu1 %v1250_v15  ;;  %v1280_v56 = vsel %vm382_vm0, %v1139_v29, %v1209_v46 }
 0x302   : > { %v1210_v55 = vrot.slane %v2195_v39, 4  ;;  %v1276_v11 = vsel %vm382_vm0, %v2195_v39, %v1208_v26 }
 0x303   : > { %v1145_v58 = vpop.permute.xlu0 %1144  ;;  %v1286_v31 = vsel %vm382_vm0, %v2076_v28, %v1211_v12 }
 0x304   : > { %v1148_v42 = vsel %vm585_vm5, %v1935_v54, %v1145_v58  ;;  %1361 = vmatpush1.bf16.msra.mxu1 %v1246_v24  ;;  %1401 = vmatprep.subr.bf16.mxu0 %v1286_v31  ;;  %v1147_v37 = vpop.permute.xlu1 %1146  ;;  %v1283_v41 = vsel %vm382_vm0, %v2074_v51, %v1210_v55 }
 0x305   : > { %v1149_v49 = vsel %vm585_vm5, %v1145_v58, %v1147_v37  ;;  %1402 = vmatpush1.bf16.msra.mxu0 %v1283_v41  ;;  %v1305_v13 = vsel %vm382_vm0, %v1148_v42, %v1208_v26  ;;  %v1206_v0 = vrot.slane %v1148_v42, 4 }
 0x306   : > { %1403 = vmatprep.subr.bf16.mxu0 %v1294_v38  ;;  %v1308_v54 = vsel %vm382_vm0, %v1149_v49, %v1209_v46  ;;  %v1207_v52 = vrot.slane %v1149_v49, 4 }
 0x307   : > { %v1155_v45 = vpop.permute.xlu0 %1154  ;;  %1362 = vmatprep.subr.bf16.mxu1 %v1308_v54  ;;  %v1268_v9 = vsel %vm382_vm0, %v2074_v51, %v1206_v0 }
 0x308   : > { %1363 = vmatpush1.bf16.msra.mxu1 %v1305_v13  ;;  %v1157_v48 = vpop.permute.xlu1 %1156  ;;  %v1272_v59 = vsel %vm382_vm0, %v2076_v28, %v1207_v52 }
 0x309   : > { %v1158_v50 = vsel %vm544_vm2, %v1155_v45, %v1157_v48  ;;  %v1159_v43 = vsel %vm544_vm2, %v1157_v48, %v1979_v62  ;;  %1633 = vmatprep.subr.msk.bf16.mxu1 %vm382_vm0, %v2094_v21  ;;  %1404 = vmatpush1.bf16.msra.mxu0 %v1290_v27  ;;  %v1082_v62 = vld [vmem:[%s2294_s7] sm:$0xf] }
 0x30a   : > { %1635 = vmatprep.subr.msk.bf16.mxu0 %vm382_vm0, %v1159_v43  ;;  %v1339_v60 = vsel %vm382_vm0, %v1158_v50, 0  ;;  %v1215_v5 = vrot.slane %v1159_v43, 4  ;;  %v1214_v28 = vrot.slane %v1158_v50, 4 }
 0x30b   : > { %v1175_v61 = vpop.permute.xlu0 %1174 }
 0x30c   : > { %1365 = vmatpush1.bf16.msra.mxu1 %v1334_v44  ;;  %v1183_v7 = vpop.permute.xlu1 %1182  ;;  %v1177_v53 = vsel %vm708_vm10, %v1175_v61, %v2011_v14  ;;  %v1298_v33 = vsel %vm382_vm0, %v2090_v19, %v1214_v28 }
 0x30d   : > { %1406 = vmatpush1.bf16.msra.mxu0 %v1339_v60  ;;  %1438 = vmatprep.subr.bf16.mxu1 %v1242_v63  ;;  %v1185_v6 = vsel %vm708_vm10, %v1183_v7, %v2011_v14  ;;  %v1302_v14 = vsel %vm382_vm0, %v2094_v21, %v1215_v5  ;;  %v1217_v51 = vrot.slane %v1177_v53, 4 }
 0x30e   : > { %1479 = vmatprep.subr.bf16.mxu0 %v1250_v15  ;;  %v1219_v18 = vrot.slane %v1185_v6, 4 }
 0x30f   : > { %v1173_v2 = vpop.permute.xlu0 %1172  ;;  %1634 = vmatmul.mubr.msk.bf16.vlgmr.msra.gmra.mrb[8].mxu1 %vm876_vm9, %v1082_v62 }
 0x310   : > { %1636 = vmatmul.mubr.msk.bf16.vlgmr.msra.gmra.mrb[16].mxu0 %vm876_vm9, %v1082_v62  ;;  %1439 = vmatpush1.bf16.msra.mxu1 %v1238_v4  ;;  %v1181_v3 = vpop.permute.xlu1 %1180 }
 0x311   : > { %1440 = vmatprep.subr.bf16.mxu1 %v1272_v59  ;;  %1480 = vmatpush1.bf16.msra.mxu0 %v1246_v24  ;;  %v1184_v20 = vsel %vm708_vm10, %v1181_v3, %v1183_v7 }
 0x312   : > { %1481 = vmatprep.subr.bf16.mxu0 %v1280_v56  ;;  %1470 = vmatprep.mubr.bf16.mxu1 %v1678_v1  ;;  %v1218_v23 = vrot.slane %v1184_v20, 4  ;;  %v1345_v19 = vsel %vm382_vm0, %v1184_v20, 0 }
 0x313   : > { %v1167_v57 = vpop.permute.xlu0 %1166  ;;  %1511 = vmatprep.mubr.bf16.mxu0 %v1678_v1  ;;  %v1176_v1 = vsel %vm708_vm10, %v1173_v2, %v1175_v61 }
 0x314   : > { %1441 = vmatpush1.bf16.msra.mxu1 %v1268_v9  ;;  %v1165_v17 = vpop.permute.xlu1 %1164  ;;  %v1169_v32 = vsel %vm616_vm3, %v1167_v57, %v2049_v8  ;;  %v1216_v34 = vrot.slane %v1176_v1, 4  ;;  %v1324_v8 = vsel %vm382_vm0, %v1177_v53, %v1219_v18  ;;  %v1320_v36 = vsel %vm382_vm0, %v1176_v1, %v1218_v23 }
 0x315   : > { %1442 = vmatprep.subr.bf16.mxu1 %v1294_v38  ;;  %1482 = vmatpush1.bf16.msra.mxu0 %v1276_v11  ;;  %v1168_v25 = vsel %vm616_vm3, %v1165_v17, %v1167_v57  ;;  %v1316_v16 = vsel %vm382_vm0, %v1169_v32, %v1217_v51 }
 0x316   : > { %1483 = vmatprep.subr.bf16.mxu0 %v1302_v14  ;;  %v1312_v35 = vsel %vm382_vm0, %v1168_v25, %v1216_v34 }
 0x317   : > { %v1191_v40 = vpop.permute.xlu0 %1190 }
 0x318   : > { %1443 = vmatpush1.bf16.msra.mxu1 %v1290_v27  ;;  %v1193_v21 = vpop.permute.xlu1 %1192 }
 0x319   : > { %1444 = vmatprep.subr.bf16.mxu1 %v1316_v16  ;;  %1484 = vmatpush1.bf16.msra.mxu0 %v1298_v33  ;;  %v1194_v29 = vsel %vm532_vm4, %v1191_v40, %v1193_v21  ;;  %v1195_v22 = vsel %vm532_vm4, %v1193_v21, %v2062_v30 }
 0x31a   : > { %1485 = vmatprep.subr.bf16.mxu0 %v1324_v8  ;;  %v1351_v15 = vsel %vm382_vm0, %v1194_v29, 0 }
 0x31c   : > { %1445 = vmatpush1.bf16.msra.mxu1 %v1312_v35 }
 0x31d   : > { %1637 = vmatprep.subr.msk.bf16.mxu1 %vm382_vm0, %v1185_v6  ;;  %1486 = vmatpush1.bf16.msra.mxu0 %v1320_v36 }
 0x31e   : > { %1639 = vmatprep.subr.msk.bf16.mxu0 %vm382_vm0, %v1195_v22 }
 0x320   : > { %1447 = vmatpush1.bf16.msra.mxu1 %v1345_v19 }
 0x321   : > { %1488 = vmatpush1.bf16.msra.mxu0 %v1351_v15 }
 0x323   : > { %1638 = vmatmul.mubr.msk.bf16.vlgmr.msra.gmra.mrb[12].mxu1 %vm876_vm9, %v1082_v62 }
 0x324   : > { %1640 = vmatmul.mubr.msk.bf16.vlgmr.msra.gmra.mrb[20].mxu0 %vm876_vm9, %v1082_v62 }
 0x328   : > { %v1329_v12 = vpop.permute.xlu0 %1328 }
 0x3e2   : > { %v1390_v39 = vpop.f32.mrb[8].mxu1 }
 0x3e3   : > { %v1391_v10 = vadd.f32 %v1390_v39, %v1329_v12  ;;  %v1392_v30 = vpop.f32.mrb[9].mxu1  ;;  %v1431_v55 = vpop.f32.mrb[16].mxu0 }
 0x3e4   : > { %v1393_v58 = vadd.f32 %v1392_v30, %v1329_v12  ;;  %v1432_v24 = vadd.f32 %v1431_v55, %v1329_v12  ;;  %v1394_v31 = vpop.f32.mrb[10].mxu1  ;;  %v1433_v42 = vpop.f32.mrb[17].mxu0 }
 0x3e5   : > { %v1520_v37 = vmax.f32 %v1391_v10, 0.0  ;;  %v1434_v41 = vadd.f32 %v1433_v42, %v1329_v12  ;;  %v1395_v46 = vpop.f32.mrb[11].mxu1  ;;  %v1435_v47 = vpop.f32.mrb[18].mxu0 }
 0x3e6   : > { %v1521_v49 = vmax.f32 %v1393_v58, 0.0  ;;  %v1522_v38 = vmax.f32 %v1432_v24, 0.0  ;;  %v1436_v26 = vpop.f32.mrb[19].mxu0 }
 0x3e7   : > { %1528 = vst [vmem:[%s2274_s27] sm:$0xff] %v1520_v37  ;;  %v1523_v54 = vmax.f32 %v1434_v41, 0.0 }
 0x3e8   : > { %1529 = vst [vmem:[%s2274_s27 + $0x8] sm:$0xff] %v1521_v49  ;;  %1530 = vst [vmem:[%s2274_s27 + $0x10] sm:$0xff] %v1522_v38 }
 0x3e9   : > { %1531 = vst [vmem:[%s2274_s27 + $0x18] sm:$0xff] %v1523_v54 }
 0x3f6   : > { %v1472_v45 = vpop.f32.mrb[12].mxu1 }
 0x3f7   : > { %v1473_v13 = vadd.f32 %v1472_v45, %v1329_v12  ;;  %v1474_v48 = vpop.f32.mrb[13].mxu1  ;;  %v1513_v27 = vpop.f32.mrb[20].mxu0 }
 0x3f8   : > { %v1475_v50 = vadd.f32 %v1474_v48, %v1329_v12  ;;  %v1514_v43 = vadd.f32 %v1513_v27, %v1329_v12  ;;  %v1476_v61 = vpop.f32.mrb[14].mxu1  ;;  %v1515_v44 = vpop.f32.mrb[21].mxu0 }
 0x3f9   : > { %v1524_v52 = vmax.f32 %v1473_v13, 0.0  ;;  %v1516_v60 = vadd.f32 %v1515_v44, %v1329_v12  ;;  %v1477_v7 = vpop.f32.mrb[15].mxu1  ;;  %v1517_v63 = vpop.f32.mrb[22].mxu0 }
 0x3fa   : > { %v1525_v62 = vmax.f32 %v1475_v50, 0.0  ;;  %v1526_v0 = vmax.f32 %v1514_v43, 0.0  ;;  %v1518_v2 = vpop.f32.mrb[23].mxu0 }
 0x3fb   : > { %1532 = vst [vmem:[%s2274_s27 + $0x20] sm:$0xff] %v1524_v52  ;;  %v1527_v4 = vmax.f32 %v1516_v60, 0.0 }
 0x3fc   : > { %1533 = vst [vmem:[%s2274_s27 + $0x28] sm:$0xff] %v1525_v62  ;;  %1534 = vst [vmem:[%s2274_s27 + $0x30] sm:$0xff] %v1526_v0 }
 0x3fd   : > { %1535 = vst [vmem:[%s2274_s27 + $0x38] sm:$0xff] %v1527_v4 }
 0x3fe PF: > { %s19_s30 = sadd.s32 1, %s1676_s30  }
 0x3ff   : > { %p16_p4 = scmp.ge.s32.totalorder %s19_s30, 4  }
 0x401   :  { %18 = sbr.rel (!%p16_p4) target bundleno = 1 (0x1), region = 92 }

</bundles_post_ra>
